<compile_context>
chip_gen: v5e
topology: v5e:2x2
jax: 0.10.0
libtpu: 0.0.40
codegen_flags: <defaults>
</compile_context>

<pallas_src>
import functools

import numpy as np

import jax
import jax.numpy as jnp
from jax import lax
from jax.experimental import pallas as pl
from jax.experimental.pallas import tpu as pltpu

ROWS = 24        # packed slab height: max(out_channels)=8  x  3 spatial rows
KPACK = 80       # wide fused contraction:   3*24 (taps) + 8 (ones/bias block)
KNARROW = 32     # narrow fused contraction: 3*8  (taps) + 8 (ones/bias block)
NEG_SLOPE = 0.01  # torch.nn.LeakyReLU default negative_slope
BN_EPS = 1e-5     # torch.nn.BatchNorm1d/2d default eps

# Layer order inside the packed tap array.
_LAYERS = ("all1", "main1", "main2", "main3",
           "side1", "side2", "side3", "all2", "all3")
# "narrow" = the input slab fits in 8 sublanes (ci == 1 for the 2d convs, and
# the 3-channel 1d conv); those layers use the K=32 column layout.
_NARROW = {"all1": True, "main1": True, "side1": True, "all2": True,
           "main2": False, "main3": False, "side2": False, "side3": False,
           "all3": False}


def _leaky_relu(v):
    return jnp.where(v >= 0, v, NEG_SLOPE * v)


# --------------------------------------------------------------------------- #
# Kernel                                                                       #
# --------------------------------------------------------------------------- #
def _mt3_kernel(x_ref, main_ref, side_ref, taps_ref, out_ref, *, kb):
    f32 = jnp.float32
    L = x_ref.shape[-1]
    M = main_ref.shape[-1]
    S = side_ref.shape[-1]
    pdt = main_ref.dtype               # projection dtype (bf16 fast path / f32)

    # Hoisted constants (JAX does not CSE broadcasts).
    ones8_L = jnp.ones((8, L), f32)
    ones8_M = jnp.ones((8, M), f32)
    ones8_S = jnp.ones((8, S), f32)

    def shifts(v, circular=True):
        # v[:, (w-1) % W] and v[:, (w+1) % W]; for the zero-padded Conv1d the
        # wrapped column is masked with a lane-index compare (no (L,L) select).
        vm = jnp.roll(v, 1, axis=1)
        vp = jnp.roll(v, -1, axis=1)
        if not circular:
            col = lax.broadcasted_iota(jnp.int32, v.shape, 1)
            vm = jnp.where(col == 0, 0.0, vm)
            vp = jnp.where(col == v.shape[-1] - 1, 0.0, vp)
        return vm, vp

    def conv_narrow(layer, v8, ones8, out_rows=ROWS):
        """3x3 circular conv (ci == 1): one K=32 MXU dot, bias folded in."""
        vm, vp = shifts(v8)
        rhs = jnp.concatenate([vm, v8, vp, ones8], axis=0)          # (32, W)
        tap = taps_ref[layer]                                       # (24, 80)
        return jnp.dot(tap[:out_rows, :KNARROW], rhs,
                       preferred_element_type=f32)

    def conv_wide(layer, v24, ones8, out_rows=ROWS):
        """3x3 circular conv (ci > 1): one K=80 MXU dot, bias folded in."""
        vm, vp = shifts(v24)
        rhs = jnp.concatenate([vm, v24, vp, ones8], axis=0)         # (80, W)
        tap = taps_ref[layer]
        return jnp.dot(tap[:out_rows, :], rhs, preferred_element_type=f32)

    for e in range(kb):                 # small static unroll over batch block
        x3 = x_ref[e].astype(f32)       # (3, L)
        main_v = main_ref[e]            # (L, M), pdt
        side_v = side_ref[e]            # (L, S), pdt

        # ---- all_conv1 + all_bn1 + LeakyReLU  (Conv1d 3->3, zero padding) ---
        xm1, xp1 = shifts(x3, circular=False)
        t0 = taps_ref[0]                # (24, 80), only [:3, :] populated
        x_all = _leaky_relu(
            jnp.dot(t0[:8, 0:3], xm1, preferred_element_type=f32)
            + jnp.dot(t0[:8, 8:11], x3, preferred_element_type=f32)
            + jnp.dot(t0[:8, 16:19], xp1, preferred_element_type=f32)
            + t0[:8, 24:25])            # (8, L); rows 3.. are exactly zero

        x_all_p = x_all.astype(pdt)

        # ---- main branch ----------------------------------------------------
        xm = jnp.dot(x_all_p, main_v, preferred_element_type=f32)    # (8, M)
        xm = _leaky_relu(conv_narrow(1, xm, ones8_M))                 # 1->8 ch
        xm = _leaky_relu(conv_wide(2, xm, ones8_M))                   # 8->4 ch
        xm = _leaky_relu(conv_wide(3, xm, ones8_M, out_rows=8))       # 4->1 ch

        # ---- side branch ----------------------------------------------------
        xs = jnp.dot(x_all_p, side_v, preferred_element_type=f32)    # (8, S)
        xs = _leaky_relu(conv_narrow(4, xs, ones8_S))
        xs = _leaky_relu(conv_wide(5, xs, ones8_S))
        xs = _leaky_relu(conv_wide(6, xs, ones8_S, out_rows=8))       # (8, S)

        # ---- all branch -----------------------------------------------------
        xmain = lax.dot_general(xm.astype(pdt), main_v,
                                (((1,), (1,)), ((), ())),
                                preferred_element_type=f32)           # (8, L)
        xside = lax.dot_general(xs.astype(pdt), side_v,
                                (((1,), (1,)), ((), ())),
                                preferred_element_type=f32)           # (8, L)
        xa = _leaky_relu(conv_narrow(7, xmain + xside, ones8_L))      # 1->4 ch
        xa = conv_wide(8, xa, ones8_L, out_rows=8)   # all_bn3(all_conv3(.)), no lrelu

        # One lane-dense store per element: [y_main | y_side | y_all].
        out_ref[e] = jnp.concatenate([xm[:3], xs[:3], xa[:3]], axis=1)


# --------------------------------------------------------------------------- #
# pallas_call wrapper                                                          #
# --------------------------------------------------------------------------- #
def _pick_batch_block(batch, per_elem_bytes):
    """Largest k <= 8 dividing batch such that the grid keeps >= 2 steps
    (v7x has two TensorCores sharing the grid) and the double-buffered block
    set stays well under the smallest default scoped-VMEM limit (v5e: 16 MiB)."""
    best = 1
    for k in range(1, min(batch, 8) + 1):
        if batch % k:
            continue
        if batch >= 2 and batch // k < 2:
            continue
        if 2 * k * per_elem_bytes > 12 * 1024 * 1024:
            continue
        best = k
    return best


@functools.partial(jax.jit, static_argnames=("proj_dtype",))
def _forward_jit(x, main, side, taps, *, proj_dtype):
    B, C, L = x.shape
    assert C == 3, "multi_task_3_2dcnn expects 3 input channels"
    M = main.shape[-1]
    S = side.shape[-1]
    wtot = M + S + L

    x = x.astype(jnp.float32)
    main = main.astype(proj_dtype)
    side = side.astype(proj_dtype)
    taps = taps.astype(jnp.float32)

    pb = jnp.dtype(proj_dtype).itemsize
    per_elem_bytes = 3 * L * 4 + L * (M + S) * pb + 3 * wtot * 4
    kb = _pick_batch_block(B, per_elem_bytes)

    # Advisory cost estimate (no double counting of the projections).
    flops = B * (2 * 8 * L * (M + S)                                  # fwd proj
                 + 2 * 8 * (M + S) * L                                # back proj
                 + 2 * (24 * KNARROW + 24 * KPACK + 8 * KPACK) * (M + S)
                 + 2 * (3 * 8 * 3 + 24 * KNARROW + 8 * KPACK) * L)
    bytes_accessed = B * per_elem_bytes + taps.size * 4

    kernel = functools.partial(_mt3_kernel, kb=kb)
    out = pl.pallas_call(
        kernel,
        out_shape=jax.ShapeDtypeStruct((B, 3, wtot), jnp.float32),
        grid_spec=pltpu.PrefetchScalarGridSpec(
            num_scalar_prefetch=0,
            grid=(B // kb,),
            in_specs=[
                pl.BlockSpec((kb, 3, L), lambda b: (b, 0, 0)),        # x
                pl.BlockSpec((kb, L, M), lambda b: (b, 0, 0)),        # main
                pl.BlockSpec((kb, L, S), lambda b: (b, 0, 0)),        # side
                pl.BlockSpec((len(_LAYERS), ROWS, KPACK),
                             lambda b: (0, 0, 0)),                    # taps
            ],
            out_specs=pl.BlockSpec((kb, 3, wtot), lambda b: (b, 0, 0)),
        ),
        compiler_params=pltpu.CompilerParams(
            dimension_semantics=("parallel",)),
        cost_estimate=pl.CostEstimate(
            flops=int(flops), transcendentals=0,
            bytes_accessed=int(bytes_accessed)),
    )(x, main, side, taps)

    return out[:, :, :M], out[:, :, M:M + S], out[:, :, M + S:]


def multi_task_forward(x, main, side, taps, proj_dtype=jnp.bfloat16):
    """multi_task_3_2dcnn.forward -> (y_main, y_side, y_all), PyTorch layout.

    proj_dtype: dtype used for main/side and the four projection matmuls
    (bfloat16 = fast path for v6e/v7x; float32 = full-precision path).
    The conv/BN taps always stay in float32 with float32 accumulation.
    """
    return _forward_jit(x, main, side, taps, proj_dtype=jnp.dtype(proj_dtype))


# --------------------------------------------------------------------------- #
# Host-side parameter preparation: fold BN (eval) and pack fused conv taps.    #
# --------------------------------------------------------------------------- #
def _fold_bn(w, b, gamma, beta, rm, rv):
    scale = gamma / np.sqrt(rv + BN_EPS)
    w_f = w * scale.reshape((-1,) + (1,) * (w.ndim - 1))
    b_f = b * scale + (beta - rm * scale)
    return w_f.astype(np.float32), b_f.astype(np.float32)


def _pack_conv1d(w, b):
    """Conv1d(3->3,k=3,p=1), narrow layout: column kw*8 + in_channel holds
    w[:, :, kw] (applied to x shifted to x[:, l + kw - 1], zero padded);
    bias in column 24 (multiplied by the ones block)."""
    T = np.zeros((ROWS, KPACK), np.float32)
    for kw in range(3):
        T[:3, kw * 8:kw * 8 + 3] = w[:, :, kw]
    T[:3, 24] = b
    return T


def _pack_conv2d(w, b, narrow):
    """Conv2d(ci->co,k=3,p=1,circular) on a (3, W) map packed so that
    slab row = channel*3 + spatial_row.  Column kw*stride + input_slab_row
    applies to the input rolled to x[:, (w + kw - 1) % W]; the circular height
    offset is baked into the matrix.  Bias lives in column 3*stride."""
    co, ci = w.shape[0], w.shape[1]
    stride = 8 if narrow else 24
    T = np.zeros((ROWS, KPACK), np.float32)
    for o in range(co):
        for r in range(3):
            orow = o * 3 + r
            T[orow, 3 * stride] = b[o]
            for i in range(ci):
                for r_in in range(3):
                    kh = (r_in - r + 1) % 3          # circular height wrap
                    for kw in range(3):
                        T[orow, kw * stride + i * 3 + r_in] = w[o, i, kh, kw]
    return T


def prepare_kernel_params(raw):
    taps = np.zeros((len(_LAYERS), ROWS, KPACK), np.float32)
    for idx, name in enumerate(_LAYERS):
        p = raw[name]
        w_f, b_f = _fold_bn(p["w"], p["b"], p["gamma"], p["beta"],
                            p["rm"], p["rv"])
        if name == "all1":
            taps[idx] = _pack_conv1d(w_f, b_f)
        else:
            taps[idx] = _pack_conv2d(w_f, b_f, _NARROW[name])
    return jnp.asarray(taps)


def make_raw_params(key):
    """Random eval-mode parameters in the PyTorch layout (conv + BN stats)."""
    cfg = [("all1", 3, 3, True),
           ("main1", 1, 8, False), ("main2", 8, 4, False), ("main3", 4, 1, False),
           ("side1", 1, 8, False), ("side2", 8, 4, False), ("side3", 4, 1, False),
           ("all2", 1, 4, False), ("all3", 4, 1, False)]
    raw = {}
    for k, (name, ci, co, is1d) in zip(jax.random.split(key, len(cfg)), cfg):
        k1, k2, k3, k4, k5, k6 = jax.random.split(k, 6)
        wshape = (co, ci, 3) if is1d else (co, ci, 3, 3)
        fan_in = ci * (3 if is1d else 9)
        raw[name] = dict(
            w=np.asarray(jax.random.normal(k1, wshape, jnp.float32)) / np.sqrt(fan_in),
            b=np.asarray(jax.random.normal(k2, (co,), jnp.float32)) * 0.1,
            gamma=1.0 + 0.1 * np.asarray(jax.random.normal(k3, (co,), jnp.float32)),
            beta=0.1 * np.asarray(jax.random.normal(k4, (co,), jnp.float32)),
            rm=0.1 * np.asarray(jax.random.normal(k5, (co,), jnp.float32)),
            rv=np.asarray(jax.random.uniform(k6, (co,), jnp.float32, 0.5, 1.5)),
        )
    return raw


# --------------------------------------------------------------------------- #
# Pure-JAX (XLA) reference of the PyTorch forward, for correctness checking.   #
# --------------------------------------------------------------------------- #
def _reference_forward(x, main, side, raw):
    hi = lax.Precision.HIGHEST

    def bn(z, p):
        scale = p["gamma"] / np.sqrt(p["rv"] + BN_EPS)
        shift = p["beta"] - p["rm"] * scale
        shp = (1, -1) + (1,) * (z.ndim - 2)
        return z * scale.reshape(shp) + shift.reshape(shp)

    def conv1d(z, p):
        out = lax.conv_general_dilated(
            z, jnp.asarray(p["w"]), window_strides=(1,), padding=[(1, 1)],
            dimension_numbers=("NCH", "OIH", "NCH"), precision=hi)
        return out + jnp.asarray(p["b"]).reshape(1, -1, 1)

    def conv2d_circ(z, p):
        zp = jnp.concatenate([z[:, :, -1:, :], z, z[:, :, :1, :]], axis=2)
        zp = jnp.concatenate([zp[:, :, :, -1:], zp, zp[:, :, :, :1]], axis=3)
        out = lax.conv_general_dilated(
            zp, jnp.asarray(p["w"]), window_strides=(1, 1),
            padding=[(0, 0), (0, 0)],
            dimension_numbers=("NCHW", "OIHW", "NCHW"), precision=hi)
        return out + jnp.asarray(p["b"]).reshape(1, -1, 1, 1)

    x = x.astype(jnp.float32)
    main = main.astype(jnp.float32)
    side = side.astype(jnp.float32)
    x_all = _leaky_relu(bn(conv1d(x, raw["all1"]), raw["all1"]))
    x_main = jnp.einsum("bcl,blm->bcm", x_all, main, precision=hi)[:, None]
    x_main = _leaky_relu(bn(conv2d_circ(x_main, raw["main1"]), raw["main1"]))
    x_main = _leaky_relu(bn(conv2d_circ(x_main, raw["main2"]), raw["main2"]))
    x_main = _leaky_relu(bn(conv2d_circ(x_main, raw["main3"]), raw["main3"]))
    x_side = jnp.einsum("bcl,bls->bcs", x_all, side, precision=hi)[:, None]
    x_side = _leaky_relu(bn(conv2d_circ(x_side, raw["side1"]), raw["side1"]))
    x_side = _leaky_relu(bn(conv2d_circ(x_side, raw["side2"]), raw["side2"]))
    x_side = _leaky_relu(bn(conv2d_circ(x_side, raw["side3"]), raw["side3"]))
    xmain = jnp.einsum("bcm,blm->bcl", x_main[:, 0], main, precision=hi)
    xside = jnp.einsum("bcs,bls->bcl", x_side[:, 0], side, precision=hi)
    x_all2 = (xmain + xside)[:, None]
    x_all2 = _leaky_relu(bn(conv2d_circ(x_all2, raw["all2"]), raw["all2"]))
    x_all2 = bn(conv2d_circ(x_all2, raw["all3"]), raw["all3"])
    return x_main[:, 0], x_side[:, 0], x_all2[:, 0]


# --------------------------------------------------------------------------- #
if __name__ == "__main__":
    B, L, M, S = 2, 256, 128, 128
    key = jax.random.PRNGKey(0)
    kx, km, ks_, kp = jax.random.split(key, 4)
    x = jax.random.normal(kx, (B, 3, L), jnp.float32)
    main = jax.random.normal(km, (B, L, M), jnp.float32)
    side = jax.random.normal(ks_, (B, L, S), jnp.float32)

    raw = make_raw_params(kp)
    taps = prepare_kernel_params(raw)

    r_main, r_side, r_all = _reference_forward(x, main, side, raw)

    def check(outs, tol):
        y_main, y_side, y_all = outs
        assert y_main.shape == (B, 3, M)
        assert y_side.shape == (B, 3, S)
        assert y_all.shape == (B, 3, L)
        for got, ref in ((y_main, r_main), (y_side, r_side), (y_all, r_all)):
            assert bool(jnp.all(jnp.isfinite(got)))
            rel = float(jnp.max(jnp.abs(got - ref)) /
                        (jnp.max(jnp.abs(ref)) + 1e-6))
            assert rel < tol, f"kernel/reference mismatch: rel={rel}"

    # Full-precision projection path: tight check of the fused kernel math
    # (structural bugs would show up as O(1) relative error).
    out_f32 = multi_task_forward(x, main, side, taps, proj_dtype=jnp.float32)
    jax.block_until_ready(out_f32)
    check(out_f32, 2e-2)

    # Default bf16-projection fast path (halves main/side HBM traffic and uses
    # the native bf16 MXU on v6e/v7x); slightly looser tolerance.
    out_bf16 = multi_task_forward(x, main, side, taps)
    jax.block_until_ready(out_bf16)
    check(out_bf16, 5e-2)

    print("KERNEL_OK")
</pallas_src>

<mosaic_0001>
module attributes {stable_mosaic.version = 11 : i64} {
  func.func @_mt3_kernel(%arg0: i32, %arg1: memref<1x3x256xf32, #tpu.memory_space<vmem>>, %arg2: memref<1x256x128xf32, #tpu.memory_space<vmem>>, %arg3: memref<1x256x128xf32, #tpu.memory_space<vmem>>, %arg4: memref<9x24x80xf32, #tpu.memory_space<vmem>>, %arg5: memref<1x3x512xf32, #tpu.memory_space<vmem>>) attributes {dimension_semantics = [#tpu.dimension_semantics<parallel>], iteration_bounds = array<i64: 2>, scalar_prefetch = 0 : i64, scratch_operands = 0 : i64, tpu.core_type = #tpu.core_type<tc>, window_params = [{transform_indices = @transform_0, window_bounds = array<i64: 1, 3, 256>}, {transform_indices = @transform_1, window_bounds = array<i64: 1, 256, 128>}, {transform_indices = @transform_2, window_bounds = array<i64: 1, 256, 128>}, {pipeline_mode = #tpu.pipeline_mode<synchronous>, transform_indices = @transform_3, window_bounds = array<i64: 9, 24, 80>}, {transform_indices = @transform_4, window_bounds = array<i64: 1, 3, 512>}]} {
    %cst = arith.constant 1.000000e+00 : f32
    %0 = vector.broadcast %cst : f32 to vector<8x256xf32>
    %cst_0 = arith.constant 1.000000e+00 : f32
    %1 = vector.broadcast %cst_0 : f32 to vector<8x128xf32>
    %cst_1 = arith.constant 1.000000e+00 : f32
    %2 = vector.broadcast %cst_1 : f32 to vector<8x128xf32>
    %c0 = arith.constant 0 : index
    %c0_2 = arith.constant 0 : index
    %c0_3 = arith.constant 0 : index
    %3 = vector.load %arg1[%c0, %c0_2, %c0_3] : memref<1x3x256xf32, #tpu.memory_space<vmem>>, vector<1x3x256xf32>
    %4 = vector.shape_cast %3 : vector<1x3x256xf32> to vector<3x256xf32>
    %c0_4 = arith.constant 0 : index
    %c0_5 = arith.constant 0 : index
    %c0_6 = arith.constant 0 : index
    %5 = vector.load %arg2[%c0_4, %c0_5, %c0_6] : memref<1x256x128xf32, #tpu.memory_space<vmem>>, vector<1x256x128xf32>
    %6 = vector.shape_cast %5 : vector<1x256x128xf32> to vector<256x128xf32>
    %c0_7 = arith.constant 0 : index
    %c0_8 = arith.constant 0 : index
    %c0_9 = arith.constant 0 : index
    %7 = vector.load %arg3[%c0_7, %c0_8, %c0_9] : memref<1x256x128xf32, #tpu.memory_space<vmem>>, vector<1x256x128xf32>
    %8 = vector.shape_cast %7 : vector<1x256x128xf32> to vector<256x128xf32>
    %9 = vector.extract_strided_slice %4 {offsets = [0, 255], sizes = [3, 1], strides = [1, 1]} : vector<3x256xf32> to vector<3x1xf32>
    %10 = vector.extract_strided_slice %4 {offsets = [0, 0], sizes = [3, 255], strides = [1, 1]} : vector<3x256xf32> to vector<3x255xf32>
    %11 = tpu.concatenate %9, %10 in 1 : vector<3x1xf32>, vector<3x255xf32> -> vector<3x256xf32>
    %12 = vector.extract_strided_slice %4 {offsets = [0, 1], sizes = [3, 255], strides = [1, 1]} : vector<3x256xf32> to vector<3x255xf32>
    %13 = vector.extract_strided_slice %4 {offsets = [0, 0], sizes = [3, 1], strides = [1, 1]} : vector<3x256xf32> to vector<3x1xf32>
    %14 = tpu.concatenate %12, %13 in 1 : vector<3x255xf32>, vector<3x1xf32> -> vector<3x256xf32>
    %15 = tpu.iota {dimensions = array<i32: 1>} : vector<3x256xi32>
    %c0_i32 = arith.constant 0 : i32
    %16 = vector.broadcast %c0_i32 : i32 to vector<3x256xi32>
    %17 = arith.cmpi eq, %15, %16 : vector<3x256xi32>
    %cst_10 = arith.constant 0.000000e+00 : f32
    %18 = vector.broadcast %cst_10 : f32 to vector<3x256xf32>
    %19 = arith.select %17, %18, %11 : vector<3x256xi1>, vector<3x256xf32>
    %c255_i32 = arith.constant 255 : i32
    %20 = vector.broadcast %c255_i32 : i32 to vector<3x256xi32>
    %21 = arith.cmpi eq, %15, %20 : vector<3x256xi32>
    %cst_11 = arith.constant 0.000000e+00 : f32
    %22 = vector.broadcast %cst_11 : f32 to vector<3x256xf32>
    %23 = arith.select %21, %22, %14 : vector<3x256xi1>, vector<3x256xf32>
    %c0_12 = arith.constant 0 : index
    %c0_13 = arith.constant 0 : index
    %c0_14 = arith.constant 0 : index
    %24 = vector.load %arg4[%c0_12, %c0_13, %c0_14] : memref<9x24x80xf32, #tpu.memory_space<vmem>>, vector<1x24x80xf32>
    %25 = vector.shape_cast %24 : vector<1x24x80xf32> to vector<24x80xf32>
    %26 = vector.extract_strided_slice %25 {offsets = [0, 0], sizes = [8, 3], strides = [1, 1]} : vector<24x80xf32> to vector<8x3xf32>
    %cst_15 = arith.constant dense<0.000000e+00> : vector<8x256xf32>
    %27 = tpu.matmul %26, %19, %cst_15 {dimension_numbers = #tpu.dot_dimension_numbers<[1], [0], [0], [1], [0, 0, 1, 1], [], []>} : vector<8x3xf32>, vector<3x256xf32>, vector<8x256xf32> -> vector<8x256xf32>
    %28 = vector.extract_strided_slice %25 {offsets = [0, 8], sizes = [8, 3], strides = [1, 1]} : vector<24x80xf32> to vector<8x3xf32>
    %cst_16 = arith.constant dense<0.000000e+00> : vector<8x256xf32>
    %29 = tpu.matmul %28, %4, %cst_16 {dimension_numbers = #tpu.dot_dimension_numbers<[1], [0], [0], [1], [0, 0, 1, 1], [], []>} : vector<8x3xf32>, vector<3x256xf32>, vector<8x256xf32> -> vector<8x256xf32>
    %30 = arith.addf %27, %29 : vector<8x256xf32>
    %31 = vector.extract_strided_slice %25 {offsets = [0, 16], sizes = [8, 3], strides = [1, 1]} : vector<24x80xf32> to vector<8x3xf32>
    %cst_17 = arith.constant dense<0.000000e+00> : vector<8x256xf32>
    %32 = tpu.matmul %31, %23, %cst_17 {dimension_numbers = #tpu.dot_dimension_numbers<[1], [0], [0], [1], [0, 0, 1, 1], [], []>} : vector<8x3xf32>, vector<3x256xf32>, vector<8x256xf32> -> vector<8x256xf32>
    %33 = arith.addf %30, %32 : vector<8x256xf32>
    %34 = vector.extract_strided_slice %25 {offsets = [0, 24], sizes = [8, 1], strides = [1, 1]} : vector<24x80xf32> to vector<8x1xf32>
    %35 = vector.broadcast %34 : vector<8x1xf32> to vector<8x256xf32>
    %36 = arith.addf %33, %35 : vector<8x256xf32>
    %cst_18 = arith.constant 0.000000e+00 : f32
    %37 = vector.broadcast %cst_18 : f32 to vector<8x256xf32>
    %38 = arith.cmpf oge, %36, %37 : vector<8x256xf32>
    %cst_19 = arith.constant 0.00999999977 : f32
    %39 = vector.broadcast %cst_19 : f32 to vector<8x256xf32>
    %40 = arith.mulf %39, %36 : vector<8x256xf32>
    %41 = arith.select %38, %36, %40 : vector<8x256xi1>, vector<8x256xf32>
    %cst_20 = arith.constant dense<0.000000e+00> : vector<8x128xf32>
    %42 = tpu.matmul %41, %6, %cst_20 {dimension_numbers = #tpu.dot_dimension_numbers<[1], [0], [0], [1], [0, 0, 1, 1], [], []>} : vector<8x256xf32>, vector<256x128xf32>, vector<8x128xf32> -> vector<8x128xf32>
    %43 = vector.extract_strided_slice %42 {offsets = [0, 127], sizes = [8, 1], strides = [1, 1]} : vector<8x128xf32> to vector<8x1xf32>
    %44 = vector.extract_strided_slice %42 {offsets = [0, 0], sizes = [8, 127], strides = [1, 1]} : vector<8x128xf32> to vector<8x127xf32>
    %45 = tpu.concatenate %43, %44 in 1 : vector<8x1xf32>, vector<8x127xf32> -> vector<8x128xf32>
    %46 = vector.extract_strided_slice %42 {offsets = [0, 1], sizes = [8, 127], strides = [1, 1]} : vector<8x128xf32> to vector<8x127xf32>
    %47 = vector.extract_strided_slice %42 {offsets = [0, 0], sizes = [8, 1], strides = [1, 1]} : vector<8x128xf32> to vector<8x1xf32>
    %48 = tpu.concatenate %46, %47 in 1 : vector<8x127xf32>, vector<8x1xf32> -> vector<8x128xf32>
    %49 = tpu.concatenate %45, %42, %48, %1 in 0 : vector<8x128xf32>, vector<8x128xf32>, vector<8x128xf32>, vector<8x128xf32> -> vector<32x128xf32>
    %c1 = arith.constant 1 : index
    %c0_21 = arith.constant 0 : index
    %c0_22 = arith.constant 0 : index
    %50 = vector.load %arg4[%c1, %c0_21, %c0_22] : memref<9x24x80xf32, #tpu.memory_space<vmem>>, vector<1x24x80xf32>
    %51 = vector.shape_cast %50 : vector<1x24x80xf32> to vector<24x80xf32>
    %52 = vector.extract_strided_slice %51 {offsets = [0, 0], sizes = [24, 32], strides = [1, 1]} : vector<24x80xf32> to vector<24x32xf32>
    %cst_23 = arith.constant dense<0.000000e+00> : vector<24x128xf32>
    %53 = tpu.matmul %52, %49, %cst_23 {dimension_numbers = #tpu.dot_dimension_numbers<[1], [0], [0], [1], [0, 0, 1, 1], [], []>} : vector<24x32xf32>, vector<32x128xf32>, vector<24x128xf32> -> vector<24x128xf32>
    %cst_24 = arith.constant 0.000000e+00 : f32
    %54 = vector.broadcast %cst_24 : f32 to vector<24x128xf32>
    %55 = arith.cmpf oge, %53, %54 : vector<24x128xf32>
    %cst_25 = arith.constant 0.00999999977 : f32
    %56 = vector.broadcast %cst_25 : f32 to vector<24x128xf32>
    %57 = arith.mulf %56, %53 : vector<24x128xf32>
    %58 = arith.select %55, %53, %57 : vector<24x128xi1>, vector<24x128xf32>
    %59 = vector.extract_strided_slice %58 {offsets = [0, 127], sizes = [24, 1], strides = [1, 1]} : vector<24x128xf32> to vector<24x1xf32>
    %60 = vector.extract_strided_slice %58 {offsets = [0, 0], sizes = [24, 127], strides = [1, 1]} : vector<24x128xf32> to vector<24x127xf32>
    %61 = tpu.concatenate %59, %60 in 1 : vector<24x1xf32>, vector<24x127xf32> -> vector<24x128xf32>
    %62 = vector.extract_strided_slice %58 {offsets = [0, 1], sizes = [24, 127], strides = [1, 1]} : vector<24x128xf32> to vector<24x127xf32>
    %63 = vector.extract_strided_slice %58 {offsets = [0, 0], sizes = [24, 1], strides = [1, 1]} : vector<24x128xf32> to vector<24x1xf32>
    %64 = tpu.concatenate %62, %63 in 1 : vector<24x127xf32>, vector<24x1xf32> -> vector<24x128xf32>
    %65 = tpu.concatenate %61, %58, %64, %1 in 0 : vector<24x128xf32>, vector<24x128xf32>, vector<24x128xf32>, vector<8x128xf32> -> vector<80x128xf32>
    %c2 = arith.constant 2 : index
    %c0_26 = arith.constant 0 : index
    %c0_27 = arith.constant 0 : index
    %66 = vector.load %arg4[%c2, %c0_26, %c0_27] : memref<9x24x80xf32, #tpu.memory_space<vmem>>, vector<1x24x80xf32>
    %67 = vector.shape_cast %66 : vector<1x24x80xf32> to vector<24x80xf32>
    %cst_28 = arith.constant dense<0.000000e+00> : vector<24x128xf32>
    %68 = tpu.matmul %67, %65, %cst_28 {dimension_numbers = #tpu.dot_dimension_numbers<[1], [0], [0], [1], [0, 0, 1, 1], [], []>} : vector<24x80xf32>, vector<80x128xf32>, vector<24x128xf32> -> vector<24x128xf32>
    %cst_29 = arith.constant 0.000000e+00 : f32
    %69 = vector.broadcast %cst_29 : f32 to vector<24x128xf32>
    %70 = arith.cmpf oge, %68, %69 : vector<24x128xf32>
    %cst_30 = arith.constant 0.00999999977 : f32
    %71 = vector.broadcast %cst_30 : f32 to vector<24x128xf32>
    %72 = arith.mulf %71, %68 : vector<24x128xf32>
    %73 = arith.select %70, %68, %72 : vector<24x128xi1>, vector<24x128xf32>
    %74 = vector.extract_strided_slice %73 {offsets = [0, 127], sizes = [24, 1], strides = [1, 1]} : vector<24x128xf32> to vector<24x1xf32>
    %75 = vector.extract_strided_slice %73 {offsets = [0, 0], sizes = [24, 127], strides = [1, 1]} : vector<24x128xf32> to vector<24x127xf32>
    %76 = tpu.concatenate %74, %75 in 1 : vector<24x1xf32>, vector<24x127xf32> -> vector<24x128xf32>
    %77 = vector.extract_strided_slice %73 {offsets = [0, 1], sizes = [24, 127], strides = [1, 1]} : vector<24x128xf32> to vector<24x127xf32>
    %78 = vector.extract_strided_slice %73 {offsets = [0, 0], sizes = [24, 1], strides = [1, 1]} : vector<24x128xf32> to vector<24x1xf32>
    %79 = tpu.concatenate %77, %78 in 1 : vector<24x127xf32>, vector<24x1xf32> -> vector<24x128xf32>
    %80 = tpu.concatenate %76, %73, %79, %1 in 0 : vector<24x128xf32>, vector<24x128xf32>, vector<24x128xf32>, vector<8x128xf32> -> vector<80x128xf32>
    %c3 = arith.constant 3 : index
    %c0_31 = arith.constant 0 : index
    %c0_32 = arith.constant 0 : index
    %81 = vector.load %arg4[%c3, %c0_31, %c0_32] : memref<9x24x80xf32, #tpu.memory_space<vmem>>, vector<1x24x80xf32>
    %82 = vector.shape_cast %81 : vector<1x24x80xf32> to vector<24x80xf32>
    %83 = vector.extract_strided_slice %82 {offsets = [0, 0], sizes = [8, 80], strides = [1, 1]} : vector<24x80xf32> to vector<8x80xf32>
    %cst_33 = arith.constant dense<0.000000e+00> : vector<8x128xf32>
    %84 = tpu.matmul %83, %80, %cst_33 {dimension_numbers = #tpu.dot_dimension_numbers<[1], [0], [0], [1], [0, 0, 1, 1], [], []>} : vector<8x80xf32>, vector<80x128xf32>, vector<8x128xf32> -> vector<8x128xf32>
    %cst_34 = arith.constant 0.000000e+00 : f32
    %85 = vector.broadcast %cst_34 : f32 to vector<8x128xf32>
    %86 = arith.cmpf oge, %84, %85 : vector<8x128xf32>
    %cst_35 = arith.constant 0.00999999977 : f32
    %87 = vector.broadcast %cst_35 : f32 to vector<8x128xf32>
    %88 = arith.mulf %87, %84 : vector<8x128xf32>
    %89 = arith.select %86, %84, %88 : vector<8x128xi1>, vector<8x128xf32>
    %cst_36 = arith.constant dense<0.000000e+00> : vector<8x128xf32>
    %90 = tpu.matmul %41, %8, %cst_36 {dimension_numbers = #tpu.dot_dimension_numbers<[1], [0], [0], [1], [0, 0, 1, 1], [], []>} : vector<8x256xf32>, vector<256x128xf32>, vector<8x128xf32> -> vector<8x128xf32>
    %91 = vector.extract_strided_slice %90 {offsets = [0, 127], sizes = [8, 1], strides = [1, 1]} : vector<8x128xf32> to vector<8x1xf32>
    %92 = vector.extract_strided_slice %90 {offsets = [0, 0], sizes = [8, 127], strides = [1, 1]} : vector<8x128xf32> to vector<8x127xf32>
    %93 = tpu.concatenate %91, %92 in 1 : vector<8x1xf32>, vector<8x127xf32> -> vector<8x128xf32>
    %94 = vector.extract_strided_slice %90 {offsets = [0, 1], sizes = [8, 127], strides = [1, 1]} : vector<8x128xf32> to vector<8x127xf32>
    %95 = vector.extract_strided_slice %90 {offsets = [0, 0], sizes = [8, 1], strides = [1, 1]} : vector<8x128xf32> to vector<8x1xf32>
    %96 = tpu.concatenate %94, %95 in 1 : vector<8x127xf32>, vector<8x1xf32> -> vector<8x128xf32>
    %97 = tpu.concatenate %93, %90, %96, %2 in 0 : vector<8x128xf32>, vector<8x128xf32>, vector<8x128xf32>, vector<8x128xf32> -> vector<32x128xf32>
    %c4 = arith.constant 4 : index
    %c0_37 = arith.constant 0 : index
    %c0_38 = arith.constant 0 : index
    %98 = vector.load %arg4[%c4, %c0_37, %c0_38] : memref<9x24x80xf32, #tpu.memory_space<vmem>>, vector<1x24x80xf32>
    %99 = vector.shape_cast %98 : vector<1x24x80xf32> to vector<24x80xf32>
    %100 = vector.extract_strided_slice %99 {offsets = [0, 0], sizes = [24, 32], strides = [1, 1]} : vector<24x80xf32> to vector<24x32xf32>
    %cst_39 = arith.constant dense<0.000000e+00> : vector<24x128xf32>
    %101 = tpu.matmul %100, %97, %cst_39 {dimension_numbers = #tpu.dot_dimension_numbers<[1], [0], [0], [1], [0, 0, 1, 1], [], []>} : vector<24x32xf32>, vector<32x128xf32>, vector<24x128xf32> -> vector<24x128xf32>
    %cst_40 = arith.constant 0.000000e+00 : f32
    %102 = vector.broadcast %cst_40 : f32 to vector<24x128xf32>
    %103 = arith.cmpf oge, %101, %102 : vector<24x128xf32>
    %cst_41 = arith.constant 0.00999999977 : f32
    %104 = vector.broadcast %cst_41 : f32 to vector<24x128xf32>
    %105 = arith.mulf %104, %101 : vector<24x128xf32>
    %106 = arith.select %103, %101, %105 : vector<24x128xi1>, vector<24x128xf32>
    %107 = vector.extract_strided_slice %106 {offsets = [0, 127], sizes = [24, 1], strides = [1, 1]} : vector<24x128xf32> to vector<24x1xf32>
    %108 = vector.extract_strided_slice %106 {offsets = [0, 0], sizes = [24, 127], strides = [1, 1]} : vector<24x128xf32> to vector<24x127xf32>
    %109 = tpu.concatenate %107, %108 in 1 : vector<24x1xf32>, vector<24x127xf32> -> vector<24x128xf32>
    %110 = vector.extract_strided_slice %106 {offsets = [0, 1], sizes = [24, 127], strides = [1, 1]} : vector<24x128xf32> to vector<24x127xf32>
    %111 = vector.extract_strided_slice %106 {offsets = [0, 0], sizes = [24, 1], strides = [1, 1]} : vector<24x128xf32> to vector<24x1xf32>
    %112 = tpu.concatenate %110, %111 in 1 : vector<24x127xf32>, vector<24x1xf32> -> vector<24x128xf32>
    %113 = tpu.concatenate %109, %106, %112, %2 in 0 : vector<24x128xf32>, vector<24x128xf32>, vector<24x128xf32>, vector<8x128xf32> -> vector<80x128xf32>
    %c5 = arith.constant 5 : index
    %c0_42 = arith.constant 0 : index
    %c0_43 = arith.constant 0 : index
    %114 = vector.load %arg4[%c5, %c0_42, %c0_43] : memref<9x24x80xf32, #tpu.memory_space<vmem>>, vector<1x24x80xf32>
    %115 = vector.shape_cast %114 : vector<1x24x80xf32> to vector<24x80xf32>
    %cst_44 = arith.constant dense<0.000000e+00> : vector<24x128xf32>
    %116 = tpu.matmul %115, %113, %cst_44 {dimension_numbers = #tpu.dot_dimension_numbers<[1], [0], [0], [1], [0, 0, 1, 1], [], []>} : vector<24x80xf32>, vector<80x128xf32>, vector<24x128xf32> -> vector<24x128xf32>
    %cst_45 = arith.constant 0.000000e+00 : f32
    %117 = vector.broadcast %cst_45 : f32 to vector<24x128xf32>
    %118 = arith.cmpf oge, %116, %117 : vector<24x128xf32>
    %cst_46 = arith.constant 0.00999999977 : f32
    %119 = vector.broadcast %cst_46 : f32 to vector<24x128xf32>
    %120 = arith.mulf %119, %116 : vector<24x128xf32>
    %121 = arith.select %118, %116, %120 : vector<24x128xi1>, vector<24x128xf32>
    %122 = vector.extract_strided_slice %121 {offsets = [0, 127], sizes = [24, 1], strides = [1, 1]} : vector<24x128xf32> to vector<24x1xf32>
    %123 = vector.extract_strided_slice %121 {offsets = [0, 0], sizes = [24, 127], strides = [1, 1]} : vector<24x128xf32> to vector<24x127xf32>
    %124 = tpu.concatenate %122, %123 in 1 : vector<24x1xf32>, vector<24x127xf32> -> vector<24x128xf32>
    %125 = vector.extract_strided_slice %121 {offsets = [0, 1], sizes = [24, 127], strides = [1, 1]} : vector<24x128xf32> to vector<24x127xf32>
    %126 = vector.extract_strided_slice %121 {offsets = [0, 0], sizes = [24, 1], strides = [1, 1]} : vector<24x128xf32> to vector<24x1xf32>
    %127 = tpu.concatenate %125, %126 in 1 : vector<24x127xf32>, vector<24x1xf32> -> vector<24x128xf32>
    %128 = tpu.concatenate %124, %121, %127, %2 in 0 : vector<24x128xf32>, vector<24x128xf32>, vector<24x128xf32>, vector<8x128xf32> -> vector<80x128xf32>
    %c6 = arith.constant 6 : index
    %c0_47 = arith.constant 0 : index
    %c0_48 = arith.constant 0 : index
    %129 = vector.load %arg4[%c6, %c0_47, %c0_48] : memref<9x24x80xf32, #tpu.memory_space<vmem>>, vector<1x24x80xf32>
    %130 = vector.shape_cast %129 : vector<1x24x80xf32> to vector<24x80xf32>
    %131 = vector.extract_strided_slice %130 {offsets = [0, 0], sizes = [8, 80], strides = [1, 1]} : vector<24x80xf32> to vector<8x80xf32>
    %cst_49 = arith.constant dense<0.000000e+00> : vector<8x128xf32>
    %132 = tpu.matmul %131, %128, %cst_49 {dimension_numbers = #tpu.dot_dimension_numbers<[1], [0], [0], [1], [0, 0, 1, 1], [], []>} : vector<8x80xf32>, vector<80x128xf32>, vector<8x128xf32> -> vector<8x128xf32>
    %cst_50 = arith.constant 0.000000e+00 : f32
    %133 = vector.broadcast %cst_50 : f32 to vector<8x128xf32>
    %134 = arith.cmpf oge, %132, %133 : vector<8x128xf32>
    %cst_51 = arith.constant 0.00999999977 : f32
    %135 = vector.broadcast %cst_51 : f32 to vector<8x128xf32>
    %136 = arith.mulf %135, %132 : vector<8x128xf32>
    %137 = arith.select %134, %132, %136 : vector<8x128xi1>, vector<8x128xf32>
    %cst_52 = arith.constant dense<0.000000e+00> : vector<8x256xf32>
    %138 = tpu.matmul %89, %6, %cst_52 {dimension_numbers = #tpu.dot_dimension_numbers<[1], [1], [0], [0], [0, 0, 1, 0], [], []>} : vector<8x128xf32>, vector<256x128xf32>, vector<8x256xf32> -> vector<8x256xf32>
    %cst_53 = arith.constant dense<0.000000e+00> : vector<8x256xf32>
    %139 = tpu.matmul %137, %8, %cst_53 {dimension_numbers = #tpu.dot_dimension_numbers<[1], [1], [0], [0], [0, 0, 1, 0], [], []>} : vector<8x128xf32>, vector<256x128xf32>, vector<8x256xf32> -> vector<8x256xf32>
    %140 = arith.addf %138, %139 : vector<8x256xf32>
    %141 = vector.extract_strided_slice %140 {offsets = [0, 255], sizes = [8, 1], strides = [1, 1]} : vector<8x256xf32> to vector<8x1xf32>
    %142 = vector.extract_strided_slice %140 {offsets = [0, 0], sizes = [8, 255], strides = [1, 1]} : vector<8x256xf32> to vector<8x255xf32>
    %143 = tpu.concatenate %141, %142 in 1 : vector<8x1xf32>, vector<8x255xf32> -> vector<8x256xf32>
    %144 = vector.extract_strided_slice %140 {offsets = [0, 1], sizes = [8, 255], strides = [1, 1]} : vector<8x256xf32> to vector<8x255xf32>
    %145 = vector.extract_strided_slice %140 {offsets = [0, 0], sizes = [8, 1], strides = [1, 1]} : vector<8x256xf32> to vector<8x1xf32>
    %146 = tpu.concatenate %144, %145 in 1 : vector<8x255xf32>, vector<8x1xf32> -> vector<8x256xf32>
    %147 = tpu.concatenate %143, %140, %146, %0 in 0 : vector<8x256xf32>, vector<8x256xf32>, vector<8x256xf32>, vector<8x256xf32> -> vector<32x256xf32>
    %c7 = arith.constant 7 : index
    %c0_54 = arith.constant 0 : index
    %c0_55 = arith.constant 0 : index
    %148 = vector.load %arg4[%c7, %c0_54, %c0_55] : memref<9x24x80xf32, #tpu.memory_space<vmem>>, vector<1x24x80xf32>
    %149 = vector.shape_cast %148 : vector<1x24x80xf32> to vector<24x80xf32>
    %150 = vector.extract_strided_slice %149 {offsets = [0, 0], sizes = [24, 32], strides = [1, 1]} : vector<24x80xf32> to vector<24x32xf32>
    %cst_56 = arith.constant dense<0.000000e+00> : vector<24x256xf32>
    %151 = tpu.matmul %150, %147, %cst_56 {dimension_numbers = #tpu.dot_dimension_numbers<[1], [0], [0], [1], [0, 0, 1, 1], [], []>} : vector<24x32xf32>, vector<32x256xf32>, vector<24x256xf32> -> vector<24x256xf32>
    %cst_57 = arith.constant 0.000000e+00 : f32
    %152 = vector.broadcast %cst_57 : f32 to vector<24x256xf32>
    %153 = arith.cmpf oge, %151, %152 : vector<24x256xf32>
    %cst_58 = arith.constant 0.00999999977 : f32
    %154 = vector.broadcast %cst_58 : f32 to vector<24x256xf32>
    %155 = arith.mulf %154, %151 : vector<24x256xf32>
    %156 = arith.select %153, %151, %155 : vector<24x256xi1>, vector<24x256xf32>
    %157 = vector.extract_strided_slice %156 {offsets = [0, 255], sizes = [24, 1], strides = [1, 1]} : vector<24x256xf32> to vector<24x1xf32>
    %158 = vector.extract_strided_slice %156 {offsets = [0, 0], sizes = [24, 255], strides = [1, 1]} : vector<24x256xf32> to vector<24x255xf32>
    %159 = tpu.concatenate %157, %158 in 1 : vector<24x1xf32>, vector<24x255xf32> -> vector<24x256xf32>
    %160 = vector.extract_strided_slice %156 {offsets = [0, 1], sizes = [24, 255], strides = [1, 1]} : vector<24x256xf32> to vector<24x255xf32>
    %161 = vector.extract_strided_slice %156 {offsets = [0, 0], sizes = [24, 1], strides = [1, 1]} : vector<24x256xf32> to vector<24x1xf32>
    %162 = tpu.concatenate %160, %161 in 1 : vector<24x255xf32>, vector<24x1xf32> -> vector<24x256xf32>
    %163 = tpu.concatenate %159, %156, %162, %0 in 0 : vector<24x256xf32>, vector<24x256xf32>, vector<24x256xf32>, vector<8x256xf32> -> vector<80x256xf32>
    %c8 = arith.constant 8 : index
    %c0_59 = arith.constant 0 : index
    %c0_60 = arith.constant 0 : index
    %164 = vector.load %arg4[%c8, %c0_59, %c0_60] : memref<9x24x80xf32, #tpu.memory_space<vmem>>, vector<1x24x80xf32>
    %165 = vector.shape_cast %164 : vector<1x24x80xf32> to vector<24x80xf32>
    %166 = vector.extract_strided_slice %165 {offsets = [0, 0], sizes = [8, 80], strides = [1, 1]} : vector<24x80xf32> to vector<8x80xf32>
    %cst_61 = arith.constant dense<0.000000e+00> : vector<8x256xf32>
    %167 = tpu.matmul %166, %163, %cst_61 {dimension_numbers = #tpu.dot_dimension_numbers<[1], [0], [0], [1], [0, 0, 1, 1], [], []>} : vector<8x80xf32>, vector<80x256xf32>, vector<8x256xf32> -> vector<8x256xf32>
    %168 = vector.extract_strided_slice %89 {offsets = [0, 0], sizes = [3, 128], strides = [1, 1]} : vector<8x128xf32> to vector<3x128xf32>
    %169 = vector.extract_strided_slice %137 {offsets = [0, 0], sizes = [3, 128], strides = [1, 1]} : vector<8x128xf32> to vector<3x128xf32>
    %170 = vector.extract_strided_slice %167 {offsets = [0, 0], sizes = [3, 256], strides = [1, 1]} : vector<8x256xf32> to vector<3x256xf32>
    %171 = tpu.concatenate %168, %169, %170 in 1 : vector<3x128xf32>, vector<3x128xf32>, vector<3x256xf32> -> vector<3x512xf32>
    %c0_62 = arith.constant 0 : index
    %c0_63 = arith.constant 0 : index
    %c0_64 = arith.constant 0 : index
    %172 = vector.load %arg5[%c0_62, %c0_63, %c0_64] : memref<1x3x512xf32, #tpu.memory_space<vmem>>, vector<1x3x512xf32>
    %173 = vector.shape_cast %172 : vector<1x3x512xf32> to vector<3x512xf32>
    %174 = vector.shape_cast %171 : vector<3x512xf32> to vector<1x3x512xf32>
    tpu.vector_store %arg5[%c0_62, %c0_63, %c0_64], %174 {strides = array<i32>} : memref<1x3x512xf32, #tpu.memory_space<vmem>>, vector<1x3x512xf32>,
    return
  }
  func.func @transform_0(%arg0: i32) -> (i32, i32, i32) {
    %c0_i32 = arith.constant 0 : i32
    %c0_i32_0 = arith.constant 0 : i32
    %c0_i32_1 = arith.constant 0 : i32
    return %arg0, %c0_i32, %c0_i32_0 : i32, i32, i32
  }
  func.func @transform_1(%arg0: i32) -> (i32, i32, i32) {
    %c0_i32 = arith.constant 0 : i32
    %c0_i32_0 = arith.constant 0 : i32
    %c0_i32_1 = arith.constant 0 : i32
    return %arg0, %c0_i32, %c0_i32_0 : i32, i32, i32
  }
  func.func @transform_2(%arg0: i32) -> (i32, i32, i32) {
    %c0_i32 = arith.constant 0 : i32
    %c0_i32_0 = arith.constant 0 : i32
    %c0_i32_1 = arith.constant 0 : i32
    return %arg0, %c0_i32, %c0_i32_0 : i32, i32, i32
  }
  func.func @transform_3(%arg0: i32) -> (i32, i32, i32) {
    %c0_i32 = arith.constant 0 : i32
    %c0_i32_0 = arith.constant 0 : i32
    %c0_i32_1 = arith.constant 0 : i32
    %c0_i32_2 = arith.constant 0 : i32
    return %c0_i32, %c0_i32_0, %c0_i32_1 : i32, i32, i32
  }
  func.func @transform_4(%arg0: i32) -> (i32, i32, i32) {
    %c0_i32 = arith.constant 0 : i32
    %c0_i32_0 = arith.constant 0 : i32
    %c0_i32_1 = arith.constant 0 : i32
    return %arg0, %c0_i32, %c0_i32_0 : i32, i32, i32
  }
}

</mosaic_0001>

<bundles_post_ra>
// kernel: _forward_jit.1
= control target key start
LH: loop header
LB: loop body
LE: loop exit
PB: predicated region body
PF: predicated region fallthrough
CT: control target
= control target key end

     0   :  { %9 = vsyncpa [#allocation3], 0  ;;  %s2378_s0 = inlined_call_operand.vmem [shape: f32[2,3,256], index: 0, kind: input, shape index: {}]   ;;  %s2379_s1 = inlined_call_operand.hbm [shape: f32[2,256,128], index: 1, kind: input, shape index: {}]   ;;  %s2380_s2 = inlined_call_operand.hbm [shape: f32[2,256,128], index: 2, kind: input, shape index: {}]   ;;  %s2381_s3 = inlined_call_operand.hbm [shape: f32[9,24,80], index: 3, kind: input, shape index: {}]   ;;  %s2382_s4 = inlined_call_operand.vmem [shape: f32[2,3,512], index: 4, kind: output, shape index: {}]  }
   0x1   :  { %11 = vsyncpa [#allocation3 + $0x1], 0 }
   0x2   :  { %12 = vsyncpa [#allocation5], 0 }
   0x3   :  { %14 = vsyncpa [#allocation5 + $0x1], 0  ;;  %s1797_s15 = smov 0   ;;  %s1799_s16 = smov 0  }
   0x4   :  { %s1801_s17 = smov 0   ;;  %s1803_s18 = smov 0  }
   0x5 LB: > { %s1816_s19 = sadd.s32 4294967295, %s1761_s18   ;;  %p66_p0 = scmp.ne.s32.totalorder %s1753_s16, %s1749_s15  ;;  %s1761_s18 = sphi %s1803_s18, %s2392_s18   ;;  %s1757_s17 = sphi %s1801_s17, %s2391_s17   ;;  %s1753_s16 = sphi %s1799_s16, %s2390_s16   ;;  %s1749_s15 = sphi %s1797_s15, %s2389_s15  }
   0x6   : > { %p67_p1 = scmp.eq.s32.totalorder %s1816_s19, 0  ;;  %p1417_p2 = scmp.ge.s32.totalorder %s1761_s18, 1 }
   0x7   : > { %p150_p3 = scmp.lt.s32.totalorder %s1761_s18, 3  ;;  %s161_s23 = sshll.u32 %s2381_s3, 4  ;;  %s162_s23 = int_to_ptr.hbm [resolvable:$true] %s161_s23 }
   0x8   : > { %p1824_p4 = por %p67_p1, %p66_p0  ;;  %s1763_s25 = smov [#allocation6]  }
   0x9   : > { %p1831_p5 = pnand %p1417_p2, %p150_p3  ;;  %s163_s26 = sshll.u32 %s1763_s25, 4  ;;  %s164_s26 = int_to_ptr.vmem [resolvable:$true] %s163_s26 }
   0xa   : > { %s1840_s27 = sadd.s32 1, %s1761_s18   ;;  %s1764_s28 = smov 128  }
   0xb   : > { %p1482_p6 = pneg %p1831_p5  ;;  %s1765_s29 = smov 8  }
   0xc   : > { %s50_s30 = ssub.s32 %s1761_s18, %s1840_s27  ;;  %s53_s5 = sadd.s32 1, %s1757_s17 }
   0xd   : > { %p1483_p7 = pnand %p1482_p6, %p67_p1  ;;  %p51_p8 = scmp.eq.s32.totalorder %s50_s30, 0 }
   0xe   : > { %p60_p9 = scmp.ne.s32.totalorder %s1757_s17, %s1753_s16  ;;  %p61_p10 = scmp.eq.s32.totalorder %s1761_s18, 0 }
   0xf   : > { %1485 = dma.hbm_to_vmem [thread:$0]  (!%p1483_p7), %s162_s23, 3456, %s164_s26, [#allocation5], %s1764_s28, %s1764_s28, %s1765_s29  }
  0x10   : > { %p1494_p11 = scmp.lt.s32.totalorder %s1761_s18, 2  ;;  %p62_p12 = por %p61_p10, %p60_p9 }
  0x11   : > { %s1853_s6 = scalar_select %p51_p8, %s1757_s17, %s53_s5  }
  0x12   : > { %s185_s7 = sand.u32 1, %s1757_s17   ;;  %s1470_s9 = sshll.u32 %s1761_s18, 8 }
  0x13   : > { %s1856_s8 = sshll.u32 %s185_s7, 8  ;;  %s194_s12 = scalar_lea.hbm %s2379_s1, %s1470_s9 }
  0x14   : > { %s189_s13 = scalar_lea.vmem [#allocation2], %s1856_s8  ;;  %s195_s15 = sshll.u32 %s194_s12, 4  ;;  %s196_s15 = int_to_ptr.hbm [resolvable:$true] %s195_s15 }
  0x15   : > { %s197_s14 = sshll.u32 %s189_s13, 4  ;;  %p1863_p13 = pnand %p1494_p11, %p62_p12  ;;  %s198_s14 = int_to_ptr.vmem [resolvable:$true] %s197_s14 }
  0x16   : > { %s216_s25 = scalar_lea.hbm %s2380_s2, %s1470_s9  ;;  %s186_s30 = scalar_lea.sflag [#allocation3], %s185_s7 }
  0x17   : > { %s217_s26 = sshll.u32 %s216_s25, 4  ;;  %s1659_s5 = sshra.s32 %s196_s15, 4  ;;  %s1660_s5 = int_to_ptr.hbm [resolvable:$true] %s1659_s5  ;;  %s218_s26 = int_to_ptr.hbm [resolvable:$true] %s217_s26 }
  0x18   : > { %s1661_s10 = scalar_lea.hbm %s1660_s5, 256  ;;  %p1663_p2 = pneg %p1863_p13 }
  0x19   : > { %p1662_p0 = scmp.ne.s32.totalorder %s1660_s5, %s1661_s10  ;;  %s1666_s13 = scalar_lea.hbm %s2379_s1, 512 }
  0x1a   : > { %p1667_p7 = scmp.lt.s32.totalorder %s1660_s5, %s2379_s1  ;;  %p1668_p8 = scmp.lt.s32.totalorder %s1666_s13, %s1661_s10 }
  0x1b   : > { %p1664_p3 = pnand %p1663_p2, %p1662_p0 }
  0x1c   : > { %p1669_p9 = por %p1668_p8, %p1667_p7 }
  0x1d   : > { %p1665_p6 = pneg %p1664_p3 }
  0x1f   : > { %p1670_p10 = pnand %p1669_p9, %p1665_p6 }
  0x21   : > { %1673 = shalt.err (!%p1670_p10)
}
  0x22   : > { %1489 = dma.hbm_to_vmem [thread:$0]  (!%p1863_p13), %s196_s15, 4096, %s198_s14, %s186_s30, %s1764_s28, %s1764_s28, %s1765_s29  }
  0x23   : > { %s211_s7 = scalar_lea.vmem [#allocation4], %s1856_s8  ;;  %s207_s25 = sand.u32 1, %s1761_s18  }
  0x24   : > { %s219_s9 = sshll.u32 %s211_s7, 4  ;;  %s208_s11 = scalar_lea.sflag [#allocation5], %s207_s25  ;;  %s220_s9 = int_to_ptr.vmem [resolvable:$true] %s219_s9 }
  0x25   : > { %s1689_s5 = sshra.s32 %s218_s26, 4  ;;  %s1696_s22 = scalar_lea.hbm %s2380_s2, 512  ;;  %s1690_s5 = int_to_ptr.hbm [resolvable:$true] %s1689_s5 }
  0x26   : > { %s1691_s10 = scalar_lea.hbm %s1690_s5, 256  ;;  %p1697_p3 = scmp.lt.s32.totalorder %s1690_s5, %s2380_s2 }
  0x27   : > { %p1692_p11 = scmp.ne.s32.totalorder %s1690_s5, %s1691_s10  ;;  %p1698_p6 = scmp.lt.s32.totalorder %s1696_s22, %s1691_s10 }
  0x29   : > { %p1694_p12 = pnand %p1692_p11, %p1663_p2  ;;  %p1699_p7 = por %p1698_p6, %p1697_p3 }
  0x2b   : > { %p1695_p0 = pneg %p1694_p12 }
  0x2d   : > { %p1700_p8 = pnand %p1699_p7, %p1695_p0 }
  0x2f   : > { %1703 = shalt.err (!%p1700_p8)
}
  0x30   : > { %1492 = dma.hbm_to_vmem [thread:$0]  (!%p1863_p13), %s218_s26, 4096, %s220_s9, %s208_s11, %s1764_s28, %s1764_s28, %s1765_s29  }
  0x31   : > { %231 = sbr.rel (%p1831_p5) target bundleno = 2520 (0x9d8), region = 36 }
  0x36   : > { %s233_s18 = sand.u32 1, %s1753_s16  }
  0x37   : > { %s1427_s8 = sshll.u32 %s233_s18, 8  ;;  %s234_s15 = scalar_lea.sflag [#allocation3], %s233_s18 }
  0x38   : > { %s1905_s30 = scalar_lea.vmem [#allocation2], %s1427_s8 }
  0x39   : > { %1736 = dma.done.wait (%p1824_p4), %s234_s15, 4096  }
  0x3a   : > { %1738 = vsyncadd (%p1824_p4), %s234_s15, 4294963200  ;;  %s243_s21 = sand.u32 1, %s1816_s19   ;;  %s1912_s28 = scalar_lea.vmem [#allocation4], %s1427_s8 }
  0x3b   : > { %s244_s7 = scalar_lea.sflag [#allocation5], %s243_s21 }
  0x3c   : > { %1740 = dma.done.wait (%p1824_p4), %s244_s7, 4096  }
  0x3d   : > { %1742 = vsyncadd (%p1824_p4), %s244_s7, 4294963200 }
  0x3e   : > { %1744 = dma.done.wait (%p67_p1), [#allocation5], 3456  }
  0x3f   : > { %1746 = vsyncadd (%p67_p1), [#allocation5], 4294963840  ;;  %p288_p5 = scmp.lt.s32.totalorder %s1816_s19, 1  ;;  %s1766_s20 = smov 1   ;;  %v409_v4 = vld [vmem:[#allocation6] sm:$0xff]  ;;  %vm419_vm0 = vcmask 1042432   ;;  %v398_v10 = vlaneseq }
  0x40   : > { %s1767_s25 = smov 120   ;;  %s1768_s11 = smov 127   ;;  %v1770_v13 = vmov 24   ;;  %vm388_vm1 = vcmask 1039360   ;;  %vm376_vm3 = vcmask 7168   ;;  %vm416_vm5 = vcmask 23552  }
  0x41   : > { %s2394_s19 = smov (!%p288_p5, %s1816_s19), 1  ;;  %s1769_s5 = smov 112   ;;  %v399_v12 = vand.u32 127, %v398_v10  ;;  %1537 = vset.pattern.permute.xlu2 %v1770_v13  ;;  %1628 = vset.pattern.permute.xlu0 %v1770_v13  ;;  %v1943_v23 = vld [vmem:[%s1905_s30 + $0xf8] sm:$0xff]  ;;  %v1952_v26 = vld [vmem:[%s1905_s30 + $0xf0] sm:$0xff]  ;;  %v1961_v28 = vld [vmem:[%s1905_s30 + $0xe8] sm:$0xff] }
  0x42   : > { %s1472_s24 = sshll.u32 %s2394_s19, 3  ;;  %v1947_v25 = vld [vmem:[%s1905_s30 + $0x78] sm:$0xff]  ;;  %v1956_v27 = vld [vmem:[%s1905_s30 + $0x70] sm:$0xff]  ;;  %v1966_v29 = vld [vmem:[%s1905_s30 + $0x68] sm:$0xff]  ;;  %vm627_vm8 = vcmask 261120   ;;  %vm697_vm12 = vcmask 654336  }
  0x43   : > { %s292_s9 = scalar_lea.vmem %s2378_s0, %s1472_s24  ;;  %v400_v14 = vadd.s32 128, %v399_v12  ;;  %vm401_vm4 = vcmp.eq.s32.totalorder %v399_v12, 0  ;;  %v1970_v32 = vld [vmem:[%s1905_s30 + $0xe0] sm:$0xff]  ;;  %v1981_v35 = vld [vmem:[%s1905_s30 + $0xd8] sm:$0xff]  ;;  %v1989_v37 = vld [vmem:[%s1905_s30 + $0xd0] sm:$0xff]  ;;  %s1473_s10 = sshll.u32 %s2394_s19, 4 }
  0x44   : > { %v298_v0 = vld [vmem:[%s292_s9] sm:$0x77]  ;;  %v1976_v34 = vld [vmem:[%s1905_s30 + $0x60] sm:$0xff]  ;;  %v1992_v38 = vld [vmem:[%s1905_s30 + $0x50] sm:$0xff]  ;;  %s2326_s22 = scalar_lea.vmem %s2382_s4, %s1473_s10 }
  0x45   : > { %364 = vst [vmem:[#allocation1] ss:$2 sm:$0xff] %v298_v0  ;;  %vm406_vm2 = vcmp.eq.s32.totalorder %v400_v14, 255  ;;  %v1984_v36 = vld [vmem:[%s1905_s30 + $0x58] sm:$0xff]  ;;  %v1997_v39 = vld [vmem:[%s1905_s30 + $0x48] sm:$0xff]  ;;  %v2007_v42 = vld [vmem:[%s1905_s30 + $0x40] sm:$0xff] }
  0x46   : > { %v2001_v40 = vld [vmem:[%s1905_s30 + $0xc8] sm:$0xff]  ;;  %v2010_v43 = vld [vmem:[%s1905_s30 + $0xc0] sm:$0xff]  ;;  %v2015_v44 = vld [vmem:[%s1905_s30 + $0x38] sm:$0xff] }
  0x47   : > { %v2020_v45 = vld [vmem:[%s1905_s30 + $0x30] sm:$0xff]  ;;  %v2024_v46 = vld [vmem:[%s1905_s30 + $0x28] sm:$0xff]  ;;  %v2028_v47 = vld [vmem:[%s1905_s30 + $0x20] sm:$0xff] }
  0x48   : > { %v2032_v48 = vld [vmem:[%s1905_s30 + $0x18] sm:$0xff]  ;;  %v2036_v49 = vld [vmem:[%s1905_s30 + $0x10] sm:$0xff]  ;;  %v2040_v50 = vld [vmem:[%s1905_s30 + $0x8] sm:$0xff] }
  0x49   : > { %v2044_v51 = vld [vmem:[%s1905_s30] sm:$0xff]  ;;  %v2048_v52 = vld [vmem:[%s1912_s28 + $0xf8] sm:$0xff]  ;;  %v2052_v53 = vld [vmem:[%s1912_s28 + $0xf0] sm:$0xff] }
  0x4a   : > { %v2056_v54 = vld [vmem:[%s1912_s28 + $0xe8] sm:$0xff]  ;;  %v2060_v55 = vld [vmem:[%s1912_s28 + $0xe0] sm:$0xff]  ;;  %v2065_v56 = vld [vmem:[%s1905_s30 + $0xb8] sm:$0xff] }
  0x4b   : > { %v2068_v57 = vld [vmem:[%s1912_s28 + $0xd8] sm:$0xff]  ;;  %v2073_v58 = vld [vmem:[%s1905_s30 + $0xb0] sm:$0xff]  ;;  %v2079_v60 = vld [vmem:[%s1905_s30 + $0xa8] sm:$0xff] }
  0x4c   : > { %v365_v1 = vld.sshfl [vmem:[#allocation1 + $0x8] sm:$0xff pattern:$0x75316420]  ;;  %v2076_v59 = vld [vmem:[%s1912_s28 + $0xd0] sm:$0xff]  ;;  %v2082_v61 = vld [vmem:[%s1912_s28 + $0xc8] sm:$0xff] }
  0x4d   : > { %366 = vrot.lane.b32.xlu0 %v365_v1, %s1766_s20  ;;  %369 = vst [vmem:[#allocation1] ss:$2 sm:$0xff] %v298_v0  ;;  %v2087_v62 = vld [vmem:[%s1905_s30 + $0xa0] sm:$0xff]  ;;  %v2100_v1 = vld [vmem:[%s1912_s28 + $0xb8] sm:$0xff]  ;;  %v2136_v10 = vld [vmem:[%s1912_s28 + $0x88] sm:$0xff] }
  0x4e   : > { %v2090_v63 = vld [vmem:[%s1912_s28 + $0xc0] sm:$0xff] }
  0x54   : > { %v371_v2 = vld.sshfl [vmem:[#allocation1 + $0x8] sm:$0xff pattern:$0x75316420]  ;;  %v370_v3 = vld.sshfl [vmem:[#allocation1] sm:$0xff pattern:$0x75316420] }
  0x55   : > { %374 = vrot.lane.b32.xlu1 %v371_v2, %s1766_s20  ;;  %372 = vrot.lane.b32.xlu0 %v370_v3, %s1766_s20  ;;  %381 = vst [vmem:[#allocation1] ss:$2 sm:$0xff] %v298_v0  ;;  %v2105_v2 = vld [vmem:[%s1905_s30 + $0x90] sm:$0xff] }
  0x56   : > { %v2108_v3 = vld [vmem:[%s1912_s28 + $0xb0] sm:$0xff] }
  0x5c   : > { %v382_v5 = vld.sshfl [vmem:[#allocation1] sm:$0xff pattern:$0x75316420]  ;;  %v383_v6 = vld.sshfl [vmem:[#allocation1 + $0x8] sm:$0xff pattern:$0x75316420] }
  0x5d   : > { %411 = vrot.lane.b32.xlu1 %v409_v4, %s1767_s25  ;;  %384 = vrot.lane.b32.xlu0 %v382_v5, %s1768_s11  ;;  %392 = vst [vmem:[#allocation1] ss:$2 sm:$0xff] %v298_v0  ;;  %v2116_v5 = vld [vmem:[%s1912_s28 + $0xa8] sm:$0xff] }
  0x5e   : > { %386 = vrot.lane.b32.xlu2 %v383_v6, %s1768_s11  ;;  %v2119_v6 = vld [vmem:[%s1905_s30 + $0x80] sm:$0xff] }
  0x5f   : > { %2387 = vst [vmem:[#allocation10_spill] sm:$0xff] %v2119_v6 }
  0x64   : > { %v393_v7 = vld.sshfl [vmem:[#allocation1] sm:$0xff pattern:$0x75316420] }
  0x65   : > { %512 = vrot.lane.b32.xlu1 %v409_v4, %s1769_s5  ;;  %413 = vst [vmem:[#allocation1] ss:$2 sm:$0xff] %v298_v0  ;;  %v2097_v0 = vld [vmem:[%s1905_s30 + $0x98] sm:$0xff] }
  0x66   : > { %394 = vrot.lane.b32.xlu2 %v393_v7, %s1768_s11  ;;  %v2122_v7 = vld [vmem:[%s1912_s28 + $0xa0] sm:$0xff] }
  0x6c   : > { %v415_v8 = vld.sshfl [vmem:[#allocation1 + $0x8] sm:$0xff pattern:$0x75316420]  ;;  %v414_v9 = vld.sshfl [vmem:[#allocation1] sm:$0xff pattern:$0x75316420] }
  0x6d   : > { %1436 = vmatpush.msk.msra.mxu1 %vm419_vm0, %v415_v8  ;;  %1434 = vmatpush.msk.msra.mxu0 %vm419_vm0, %v414_v9  ;;  %v2129_v8 = vld [vmem:[%s1912_s28 + $0x98] sm:$0xff]  ;;  %v2132_v9 = vld [vmem:[%s1912_s28 + $0x90] sm:$0xff] }
  0x6e   : > { %565 = vperm.xlu2 %1537, %v409_v4  }
  0xb8   : > { %v387_v11 = vpop.permute.xlu2 %386 }
  0xbf   : > { %v367_v15 = vpop.permute.xlu0 %366 }
  0xc0   : > { %v395_v16 = vpop.permute.xlu2 %394 }
  0xc1   : > { %v397_v17 = vsel %vm388_vm1, %v387_v11, %v395_v16 }
  0xc2   : > { %v408_v18 = vsel %vm406_vm2, 0.0, %v397_v17 }
  0xc3   : > { %1444 = vmatpush.msk.msrb.mxu1 %vm419_vm0, %v408_v18 }
  0xc7   : > { %v375_v19 = vpop.permute.xlu1 %374  ;;  %v373_v20 = vpop.permute.xlu0 %372 }
  0xc8   : > { %v377_v21 = vsel %vm376_vm3, %v373_v20, %v375_v19  ;;  %v380_v22 = vsel %vm376_vm3, %v367_v15, %v373_v20  ;;  %v566_v18 = vpop.permute.xlu2 %565 }
  0xc9   : > { %1440 = vmatpush.msk.msra.mxu3 %vm419_vm0, %v377_v21  ;;  %v403_v24 = vsel %vm401_vm4, 0.0, %v380_v22 }
  0xca   : > { %1438 = vmatpush.msk.msra.mxu2 %vm419_vm0, %v403_v24  ;;  %1441 = vmatmul.msk.f32.vlgmr.msra.gmra.mxu3 %vm416_vm5, %v409_v4 }
  0xcb   : > { %1439 = vmatmul.msk.f32.vlgmr.msra.gmra.mxu2 %vm416_vm5, %v409_v4  ;;  %596 = vmatpush.msrb.mxu3 %v1943_v23  ;;  %v2111_v4 = vld [vmem:[%s1905_s30 + $0x88] sm:$0xff] }
  0xcc   : > { %576 = vmatpush.msrb.mxu2 %v1947_v25 }
  0xcd   : > { %597 = vmatpush.msrb.mxu3 %v1952_v26 }
  0xce   : > { %577 = vmatpush.msrb.mxu2 %v1956_v27 }
  0xcf   : > { %v412_v30 = vpop.permute.xlu1 %411  ;;  %v385_v31 = vpop.permute.xlu0 %384  ;;  %598 = vmatpush.msrb.mxu3 %v1961_v28 }
  0xd0   : > { %1435 = vmatmul.msk.f32.vlgmr.msra.gmra.mxu0 %vm416_vm5, %v412_v30  ;;  %1437 = vmatmul.msk.f32.vlgmr.msra.gmra.mxu1 %vm416_vm5, %v412_v30  ;;  %v389_v33 = vsel %vm388_vm1, %v385_v31, %v387_v11  ;;  %v2140_v11 = vld [vmem:[%s1912_s28 + $0x80] sm:$0xff] }
  0xd1   : > { %1442 = vmatpush.msk.msrb.mxu0 %vm419_vm0, %v389_v33  ;;  %578 = vmatpush.msrb.mxu2 %v1966_v29 }
  0xd2   : > { %599 = vmatpush.msrb.mxu3 %v1970_v32 }
  0xd3   : > { %579 = vmatpush.msrb.mxu2 %v1976_v34 }
  0xd4   : > { %600 = vmatpush.msrb.mxu3 %v1981_v35 }
  0xd5   : > { %580 = vmatpush.msrb.mxu2 %v1984_v36 }
  0xd6   : > { %601 = vmatpush.msrb.mxu3 %v1989_v37 }
  0xd7   : > { %v513_v41 = vpop.permute.xlu1 %512  ;;  %581 = vmatpush.msrb.mxu2 %v1992_v38 }
  0xd8   : > { %1443 = vmatmul.msk.f32.vlgmr.msrb.gmra.mxu0 %vm416_vm5, %v513_v41  ;;  %1445 = vmatmul.msk.f32.vlgmr.msrb.gmra.mxu1 %vm416_vm5, %v513_v41 }
  0xd9   : > { %582 = vmatpush.msrb.mxu2 %v1997_v39  ;;  %602 = vmatpush.msrb.mxu3 %v2001_v40 }
  0xdb   : > { %583 = vmatpush.msrb.mxu2 %v2007_v42  ;;  %603 = vmatpush.msrb.mxu3 %v2010_v43 }
  0xdd   : > { %584 = vmatpush.msrb.mxu2 %v2015_v44  ;;  %604 = vmatpush.msrb.mxu3 %v2065_v56 }
  0xdf   : > { %585 = vmatpush.msrb.mxu2 %v2020_v45  ;;  %605 = vmatpush.msrb.mxu3 %v2073_v58 }
  0xe1   : > { %586 = vmatpush.msrb.mxu2 %v2024_v46  ;;  %606 = vmatpush.msrb.mxu3 %v2079_v60 }
  0xe3   : > { %587 = vmatpush.msrb.mxu2 %v2028_v47  ;;  %607 = vmatpush.msrb.mxu3 %v2087_v62 }
  0xe5   : > { %588 = vmatpush.msrb.mxu2 %v2032_v48  ;;  %608 = vmatpush.msrb.mxu3 %v2097_v0 }
  0xe7   : > { %589 = vmatpush.msrb.mxu2 %v2036_v49  ;;  %609 = vmatpush.msrb.mxu3 %v2105_v2 }
  0xe9   : > { %590 = vmatpush.msrb.mxu2 %v2040_v50  ;;  %610 = vmatpush.msrb.mxu3 %v2111_v4 }
  0xeb   : > { %591 = vmatpush.msrb.mxu2 %v2044_v51  ;;  %611 = vmatpush.msrb.mxu3 %v2119_v6 }
  0xed   : > { %811 = vmatpush.msra.mxu2 %v2048_v52 }
  0xef   : > { %812 = vmatpush.msra.mxu2 %v2052_v53 }
  0xf1   : > { %813 = vmatpush.msra.mxu2 %v2056_v54 }
  0xf3   : > { %814 = vmatpush.msra.mxu2 %v2060_v55 }
  0xf5   : > { %815 = vmatpush.msra.mxu2 %v2068_v57 }
  0xf7   : > { %816 = vmatpush.msra.mxu2 %v2076_v59 }
  0xf9   : > { %817 = vmatpush.msra.mxu2 %v2082_v61 }
  0xfb   : > { %818 = vmatpush.msra.mxu2 %v2090_v63 }
  0xfd   : > { %819 = vmatpush.msra.mxu2 %v2100_v1 }
  0xff   : > { %820 = vmatpush.msra.mxu2 %v2108_v3 }
 0x101   : > { %821 = vmatpush.msra.mxu2 %v2116_v5 }
 0x103   : > { %822 = vmatpush.msra.mxu2 %v2122_v7 }
 0x105   : > { %823 = vmatpush.msra.mxu2 %v2129_v8 }
 0x107   : > { %824 = vmatpush.msra.mxu2 %v2132_v9 }
 0x109   : > { %825 = vmatpush.msra.mxu2 %v2136_v10 }
 0x10b   : > { %826 = vmatpush.msra.mxu2 %v2140_v11 }
 0x14d   : > { %v441_v12 = vpop.f32.mrf.mxu0  ;;  %v461_v13 = vpop.f32.mrf.mxu1 }
 0x14e   : > { %v509_v14 = vpop.f32.mrf.mxu3  ;;  %v489_v15 = vpop.f32.mrf.mxu2 }
 0x14f   : > { %v510_v16 = vadd.f32 %v509_v14, %v461_v13  ;;  %v490_v17 = vadd.f32 %v489_v15, %v441_v12 }
 0x155   : > { %v539_v19 = vpop.f32.mrf.mxu0  ;;  %v559_v20 = vpop.f32.mrf.mxu1 }
 0x156   : > { %v562_v21 = vadd.f32 %v539_v19, %v490_v17  ;;  %v563_v22 = vadd.f32 %v559_v20, %v510_v16 }
 0x158   : > { %v568_v24 = vadd.f32 %v566_v18, %v562_v21  ;;  %v569_v30 = vadd.f32 %v566_v18, %v563_v22  ;;  %v694_v21 = vld [vmem:[#allocation6 + $0x30] sm:$0xff] }
 0x15a   : > { %vm570_vm6 = vcmp.ge.f32.partialorder %v568_v24, 0.0  ;;  %v572_v31 = vmul.f32 0.01, %v568_v24  ;;  %vm571_vm7 = vcmp.ge.f32.partialorder %v569_v30, 0.0  ;;  %v573_v33 = vmul.f32 0.01, %v569_v30 }
 0x15c   : > { %v2144_v41 = vsel %vm570_vm6, %v568_v24, %v572_v31  ;;  %v575_v6 = vsel %vm571_vm7, %v569_v30, %v573_v33  ;;  %v2178_v24 = vld [vmem:[%s1912_s28 + $0x78] sm:$0xff]  ;;  %v2182_v30 = vld [vmem:[%s1912_s28 + $0x70] sm:$0xff]  ;;  %v2186_v31 = vld [vmem:[%s1912_s28 + $0x68] sm:$0xff] }
 0x15d   : > { %592 = vmatmul.f32.vlgmr.msrb.gmra.mxu2 %v2144_v41  ;;  %612 = vmatmul.f32.vlgmr.msrb.gmra.mxu3 %v575_v6  ;;  %v2190_v33 = vld [vmem:[%s1912_s28 + $0x60] sm:$0xff] }
 0x15e   : > { %1044 = vmatpush.xpose.msrb.mxu2 %v1947_v25  ;;  %v1771_v25 = vmov 1.0  }
 0x15f   : > { %649 = vmatpush.msra.mxu0 %v1771_v25  ;;  %713 = vmatpush.msra.mxu1 %v1771_v25 }
 0x160   : > { %863 = vmatpush.msra.mxu3 %v1771_v25 }
 0x162   : > { %1045 = vmatpush.xpose.msrb.mxu2 %v1956_v27 }
 0x165   : > { %827 = vmatmul.f32.vlgmr.msra.gmra.mxu2 %v575_v6 }
 0x166   : > { %1046 = vmatpush.xpose.msrb.mxu2 %v1966_v29 }
 0x16a   : > { %1047 = vmatpush.xpose.msrb.mxu2 %v1976_v34 }
 0x16e   : > { %1048 = vmatpush.xpose.msrb.mxu2 %v1984_v36 }
 0x172   : > { %1049 = vmatpush.xpose.msrb.mxu2 %v1992_v38  ;;  %v624_v38 = vld [vmem:[#allocation6 + $0x18] sm:$0xff] }
 0x176   : > { %1050 = vmatpush.xpose.msrb.mxu2 %v1997_v39 }
 0x17a   : > { %1051 = vmatpush.xpose.msrb.mxu2 %v2007_v42  ;;  %v625_v42 = vld [vmem:[#allocation6 + $0x20] sm:$0xff] }
 0x17e   : > { %1052 = vmatpush.xpose.msrb.mxu2 %v2015_v44  ;;  %v626_v44 = vld [vmem:[#allocation6 + $0x28] sm:$0xff] }
 0x182   : > { %1053 = vmatpush.xpose.msrb.mxu2 %v2020_v45 }
 0x186   : > { %1054 = vmatpush.xpose.msrb.mxu2 %v2024_v46 }
 0x18a   : > { %1055 = vmatpush.xpose.msrb.mxu2 %v2028_v47 }
 0x18e   : > { %1056 = vmatpush.xpose.msrb.mxu2 %v2032_v48 }
 0x192   : > { %1057 = vmatpush.xpose.msrb.mxu2 %v2036_v49 }
 0x196   : > { %1058 = vmatpush.xpose.msrb.mxu2 %v2040_v50 }
 0x19a   : > { %1059 = vmatpush.xpose.msrb.mxu2 %v2044_v51 }
 0x19e   : > { %1258 = vmatpush.msra.mxu2 %v1771_v25 }
 0x1e0   : > { %v593_v27 = vpop.f32.mrf.mxu2  ;;  %v613_v29 = vpop.f32.mrf.mxu3 }
 0x1e1   : > { %v614_v34 = vadd.f32 %v613_v29, %v593_v27  ;;  %v695_v27 = vld [vmem:[#allocation6 + $0x38] sm:$0xff] }
 0x1e2   : > { %v2194_v29 = vld [vmem:[%s1912_s28 + $0x58] sm:$0xff] }
 0x1e3   : > { %617 = vrot.lane.b32.xlu1 %v614_v34, %s1766_s20  ;;  %620 = vrot.lane.b32.xlu0 %v614_v34, %s1768_s11 }
 0x255   : > { %v621_v36 = vpop.permute.xlu0 %620  ;;  %v618_v39 = vpop.permute.xlu1 %617 }
 0x256   : > { %650 = vmatpush.msra.mxu0 %v621_v36  ;;  %v2203_v36 = vld [vmem:[%s1912_s28 + $0x48] sm:$0xff] }
 0x258   : > { %651 = vmatpush.msra.mxu0 %v614_v34  ;;  %v2199_v34 = vld [vmem:[%s1912_s28 + $0x50] sm:$0xff] }
 0x25a   : > { %652 = vmatpush.msra.mxu0 %v618_v39  ;;  %v696_v39 = vld [vmem:[#allocation6 + $0x40] sm:$0xff] }
 0x25b   : > { %1446 = vmatmul.msk.f32.vlgmr.msra.gmra.mxu0 %vm627_vm8, %v624_v38  ;;  %v2207_v38 = vld [vmem:[%s1912_s28 + $0x40] sm:$0xff] }
 0x25c   : > { %774 = vmatpush.msrb.mxu0 %v1771_v25 }
 0x263   : > { %1447 = vmatmul.msk.f32.gmra.mxu0 %vm627_vm8, %v625_v42  ;;  %v2211_v42 = vld [vmem:[%s1912_s28 + $0x38] sm:$0xff] }
 0x26b   : > { %1448 = vmatmul.msk.f32.gmra.mxu0 %vm627_vm8, %v626_v44  ;;  %v2216_v44 = vld [vmem:[%s1912_s28 + $0x30] sm:$0xff] }
 0x2d8   : > { %v654_v45 = vpop.f32.mrf.mxu0 }
 0x2d9   : > { %vm663_vm9 = vcmp.ge.f32.partialorder %v654_v45, 0.0  ;;  %v666_v46 = vmul.f32 0.01, %v654_v45 }
 0x2db   : > { %v669_v47 = vsel %vm663_vm9, %v654_v45, %v666_v46  ;;  %v2220_v45 = vld [vmem:[%s1912_s28 + $0x28] sm:$0xff]  ;;  %v2224_v46 = vld [vmem:[%s1912_s28 + $0x20] sm:$0xff] }
 0x2dc   : > { %684 = vrot.lane.b32.xlu0 %v669_v47, %s1768_s11 }
 0x2e0   : > { %v657_v48 = vpop.f32.mrf.mxu0 }
 0x2e1   : > { %v667_v49 = vmul.f32 0.01, %v657_v48  ;;  %vm664_vm10 = vcmp.ge.f32.partialorder %v657_v48, 0.0 }
 0x2e3   : > { %v670_v6 = vsel %vm664_vm10, %v657_v48, %v667_v49  ;;  %v2232_v48 = vld [vmem:[%s1912_s28 + $0x10] sm:$0xff]  ;;  %v2236_v49 = vld [vmem:[%s1912_s28 + $0x8] sm:$0xff] }
 0x2e8   : > { %v660_v50 = vpop.f32.mrf.mxu0 }
 0x2e9   : > { %vm665_vm11 = vcmp.ge.f32.partialorder %v660_v50, 0.0  ;;  %v668_v51 = vmul.f32 0.01, %v660_v50 }
 0x2eb   : > { %v671_v12 = vsel %vm665_vm11, %v660_v50, %v668_v51  ;;  %v2240_v50 = vld [vmem:[%s1912_s28] sm:$0xff]  ;;  %v840_v51 = vld [vmem:[#allocation6 + $0x68] sm:$0xff]  ;;  %vm1298_vm11 = vcmask 1043456  }
 0x2ec   : > { %v1543_v13 = vpack.i.bf16 %v670_v6, %v671_v12 }
 0x2ee   : > { %1544 = vrot.lane.b32.xlu1 %v1543_v13, %s1766_s20  ;;  %1539 = vrot.lane.b32.xlu2 %v1543_v13, %s1768_s11 }
 0x2f6   : > { %675 = vrot.lane.b32.xlu2 %v669_v47, %s1766_s20 }
 0x348   : > { %v1540_v14 = vpop.permute.xlu2 %1539 }
 0x349   : > { %v1541_v15 = vunpack.i.l.bf16 %v1540_v14  ;;  %v1542_v16 = vunpack.i.h.bf16 %v1540_v14 }
 0x34b   : > { %714 = vmatpush.msra.mxu1 %v1541_v15 }
 0x34d   : > { %715 = vmatpush.msra.mxu1 %v1542_v16 }
 0x34e   : > { %v685_v17 = vpop.permute.xlu0 %684 }
 0x34f   : > { %716 = vmatpush.msra.mxu1 %v685_v17 }
 0x350   : > { %v676_v22 = vpop.permute.xlu2 %675 }
 0x351   : > { %717 = vmatpush.msra.mxu1 %v671_v12 }
 0x353   : > { %718 = vmatpush.msra.mxu1 %v670_v6  ;;  %v841_v6 = vld [vmem:[#allocation6 + $0x70] sm:$0xff] }
 0x355   : > { %719 = vmatpush.msra.mxu1 %v669_v47  ;;  %v2228_v47 = vld [vmem:[%s1912_s28 + $0x18] sm:$0xff] }
 0x360   : > { %v1545_v18 = vpop.permute.xlu1 %1544 }
 0x361   : > { %v1546_v19 = vunpack.i.l.bf16 %v1545_v18  ;;  %v1547_v20 = vunpack.i.h.bf16 %v1545_v18 }
 0x363   : > { %720 = vmatpush.msra.mxu1 %v1546_v19 }
 0x365   : > { %721 = vmatpush.msra.mxu1 %v1547_v20 }
 0x367   : > { %722 = vmatpush.msra.mxu1 %v676_v22 }
 0x368   : > { %1449 = vmatmul.msk.f32.vlgmr.msra.gmra.mxu1 %vm697_vm12, %v694_v21 }
 0x369   : > { %791 = vmatpush.msrb.mxu1 %v2178_v24 }
 0x36b   : > { %792 = vmatpush.msrb.mxu1 %v2182_v30 }
 0x36d   : > { %793 = vmatpush.msrb.mxu1 %v2186_v31 }
 0x36f   : > { %794 = vmatpush.msrb.mxu1 %v2190_v33 }
 0x370   : > { %1450 = vmatmul.msk.f32.gmra.mxu1 %vm697_vm12, %v695_v27 }
 0x371   : > { %795 = vmatpush.msrb.mxu1 %v2194_v29 }
 0x373   : > { %796 = vmatpush.msrb.mxu1 %v2199_v34 }
 0x375   : > { %797 = vmatpush.msrb.mxu1 %v2203_v36 }
 0x377   : > { %798 = vmatpush.msrb.mxu1 %v2207_v38 }
 0x378   : > { %1451 = vmatmul.msk.f32.gmra.mxu1 %vm697_vm12, %v696_v39 }
 0x379   : > { %799 = vmatpush.msrb.mxu1 %v2211_v42 }
 0x37b   : > { %800 = vmatpush.msrb.mxu1 %v2216_v44 }
 0x37d   : > { %801 = vmatpush.msrb.mxu1 %v2220_v45 }
 0x37f   : > { %802 = vmatpush.msrb.mxu1 %v2224_v46 }
 0x381   : > { %803 = vmatpush.msrb.mxu1 %v2228_v47 }
 0x383   : > { %804 = vmatpush.msrb.mxu1 %v2232_v48 }
 0x385   : > { %805 = vmatpush.msrb.mxu1 %v2236_v49 }
 0x387   : > { %806 = vmatpush.msrb.mxu1 %v2240_v50 }
 0x388   : > { %807 = vmatmul.f32.vlgmr.msrb.gmra.mxu1 %v2144_v41 }
 0x389   : > { %1024 = vmatpush.xpose.msra.mxu1 %v2048_v52 }
 0x38d   : > { %1025 = vmatpush.xpose.msra.mxu1 %v2052_v53 }
 0x391   : > { %1026 = vmatpush.xpose.msra.mxu1 %v2056_v54 }
 0x395   : > { %1027 = vmatpush.xpose.msra.mxu1 %v2060_v55 }
 0x399   : > { %1028 = vmatpush.xpose.msra.mxu1 %v2068_v57 }
 0x39d   : > { %1029 = vmatpush.xpose.msra.mxu1 %v2076_v59 }
 0x3a1   : > { %1030 = vmatpush.xpose.msra.mxu1 %v2082_v61 }
 0x3a5   : > { %1031 = vmatpush.xpose.msra.mxu1 %v2090_v63 }
 0x3a9   : > { %1032 = vmatpush.xpose.msra.mxu1 %v2100_v1  ;;  %v828_v1 = vpop.f32.mrf.mxu2 }
 0x3ad   : > { %1033 = vmatpush.xpose.msra.mxu1 %v2108_v3 }
 0x3b1   : > { %1034 = vmatpush.xpose.msra.mxu1 %v2116_v5 }
 0x3b5   : > { %1035 = vmatpush.xpose.msra.mxu1 %v2122_v7 }
 0x3b9   : > { %1036 = vmatpush.xpose.msra.mxu1 %v2129_v8 }
 0x3bd   : > { %1037 = vmatpush.xpose.msra.mxu1 %v2132_v9 }
 0x3c1   : > { %1038 = vmatpush.xpose.msra.mxu1 %v2136_v10 }
 0x3c5   : > { %1039 = vmatpush.xpose.msra.mxu1 %v2140_v11  ;;  %v839_v11 = vld [vmem:[#allocation6 + $0x60] sm:$0xff] }
 0x3c9   : > { %1155 = vmatpush.msrb.mxu1 %v1771_v25 }
 0x3e5   : > { %v724_v52 = vpop.f32.mrf.mxu1 }
 0x3e6   : > { %v736_v19 = vmul.f32 0.01, %v724_v52  ;;  %vm733_vm2 = vcmp.ge.f32.partialorder %v724_v52, 0.0 }
 0x3e8   : > { %v739_v22 = vsel %vm733_vm2, %v724_v52, %v736_v19 }
 0x3ed   : > { %v727_v53 = vpop.f32.mrf.mxu1 }
 0x3ee   : > { %v737_v54 = vmul.f32 0.01, %v727_v53  ;;  %vm734_vm13 = vcmp.ge.f32.partialorder %v727_v53, 0.0 }
 0x3f0   : > { %v740_v59 = vsel %vm734_vm13, %v727_v53, %v737_v54 }
 0x3f5   : > { %v730_v55 = vpop.f32.mrf.mxu1 }
 0x3f6   : > { %vm735_vm14 = vcmp.ge.f32.partialorder %v730_v55, 0.0  ;;  %v738_v57 = vmul.f32 0.01, %v730_v55 }
 0x3f8   : > { %v741_v61 = vsel %vm735_vm14, %v730_v55, %v738_v57 }
 0x3f9   : > { %v1548_v63 = vpack.i.bf16 %v740_v59, %v741_v61 }
 0x3fb   : > { %1549 = vrot.lane.b32.xlu2 %v1548_v63, %s1768_s11 }
 0x403   : > { %1564 = vrot.lane.b32.xlu2 %v1548_v63, %s1766_s20 }
 0x405   : > { %v808_v3 = vpop.f32.mrf.mxu1 }
 0x406   : > { %v829_v5 = vadd.f32 %v828_v1, %v808_v3  ;;  %v764_v3 = vld [vmem:[#allocation6 + $0x48] sm:$0xff] }
 0x408   : > { %832 = vrot.lane.b32.xlu1 %v829_v5, %s1766_s20  ;;  %835 = vrot.lane.b32.xlu0 %v829_v5, %s1768_s11 }
 0x455   : > { %v1550_v7 = vpop.permute.xlu2 %1549 }
 0x456   : > { %v1551_v8 = vunpack.i.l.bf16 %v1550_v7  ;;  %v1552_v9 = vunpack.i.h.bf16 %v1550_v7 }
 0x458   : > { %775 = vmatpush.msrb.mxu0 %v1551_v8 }
 0x45a   : > { %776 = vmatpush.msrb.mxu0 %v1552_v9 }
 0x45d   : > { %v1565_v55 = vpop.permute.xlu2 %1564 }
 0x45e   : > { %v1566_v57 = vunpack.i.l.bf16 %v1565_v55  ;;  %v1567_v1 = vunpack.i.h.bf16 %v1565_v55  ;;  %v1106_v55 = vld [vmem:[#allocation6 + $0xb0] sm:$0xff] }
 0x47a   : > { %v836_v10 = vpop.permute.xlu0 %835  ;;  %v833_v41 = vpop.permute.xlu1 %832 }
 0x47b   : > { %864 = vmatpush.msra.mxu3 %v836_v10 }
 0x47d   : > { %865 = vmatpush.msra.mxu3 %v829_v5 }
 0x47f   : > { %866 = vmatpush.msra.mxu3 %v833_v41  ;;  %v908_v41 = vld [vmem:[#allocation6 + $0x78] sm:$0xff] }
 0x480   : > { %1453 = vmatmul.msk.f32.vlgmr.msra.gmra.mxu3 %vm627_vm8, %v839_v11 }
 0x481   : > { %987 = vmatpush.msrb.mxu3 %v1771_v25 }
 0x488   : > { %1454 = vmatmul.msk.f32.gmra.mxu3 %vm627_vm8, %v840_v51  ;;  %v909_v51 = vld [vmem:[#allocation6 + $0x80] sm:$0xff] }
 0x490   : > { %1455 = vmatmul.msk.f32.gmra.mxu3 %vm627_vm8, %v841_v6  ;;  %v910_v6 = vld [vmem:[#allocation6 + $0x88] sm:$0xff] }
 0x503   : > { %v868_v12 = vpop.f32.mrf.mxu3 }
 0x504   : > { %v880_v13 = vmul.f32 0.01, %v868_v12  ;;  %vm877_vm15 = vcmp.ge.f32.partialorder %v868_v12, 0.0 }
 0x506   : > { %v883_v16 = vsel %vm877_vm15, %v868_v12, %v880_v13 }
 0x50b   : > { %v871_v14 = vpop.f32.mrf.mxu3 }
 0x50c   : > { %vm878_vm0 = vcmp.ge.f32.partialorder %v871_v14, 0.0  ;;  %v881_v15 = vmul.f32 0.01, %v871_v14 }
 0x50e   : > { %v884_v17 = vsel %vm878_vm0, %v871_v14, %v881_v15 }
 0x50f   : > { %v1558_v18 = vpack.i.bf16 %v883_v16, %v884_v17 }
 0x511   : > { %1559 = vrot.lane.b32.xlu1 %v1558_v18, %s1768_s11 }
 0x513   : > { %v874_v20 = vpop.f32.mrf.mxu3 }
 0x514   : > { %vm879_vm4 = vcmp.ge.f32.partialorder %v874_v20, 0.0  ;;  %v882_v21 = vmul.f32 0.01, %v874_v20 }
 0x516   : > { %v885_v27 = vsel %vm879_vm4, %v874_v20, %v882_v21 }
 0x517   : > { %v1553_v39 = vpack.i.bf16 %v885_v27, %v739_v22 }
 0x519   : > { %1574 = vrot.lane.b32.xlu1 %v1558_v18, %s1766_s20  ;;  %1554 = vrot.lane.b32.xlu0 %v1553_v39, %s1768_s11 }
 0x521   : > { %1569 = vrot.lane.b32.xlu0 %v1553_v39, %s1766_s20  ;;  %v1105_v39 = vld [vmem:[#allocation6 + $0xa8] sm:$0xff] }
 0x583   : > { %v1560_v5 = vpop.permute.xlu1 %1559 }
 0x584   : > { %v1561_v8 = vunpack.i.l.bf16 %v1560_v5 }
 0x58b   : > { %v1555_v53 = vpop.permute.xlu0 %1554 }
 0x58c   : > { %v1556_v54 = vunpack.i.l.bf16 %v1555_v53  ;;  %v1557_v7 = vunpack.i.h.bf16 %v1555_v53 }
 0x58e   : > { %777 = vmatpush.msrb.mxu0 %v1556_v54 }
 0x590   : > { %778 = vmatpush.msrb.mxu0 %v741_v61  ;;  %v1562_v61 = vunpack.i.h.bf16 %v1560_v5 }
 0x592   : > { %779 = vmatpush.msrb.mxu0 %v740_v59  ;;  %v1575_v59 = vpop.permute.xlu1 %1574 }
 0x593   : > { %v1570_v63 = vpop.permute.xlu0 %1569  ;;  %v1576_v10 = vunpack.i.l.bf16 %v1575_v59  ;;  %v1577_v11 = vunpack.i.h.bf16 %v1575_v59 }
 0x594   : > { %780 = vmatpush.msrb.mxu0 %v739_v22  ;;  %v1571_v52 = vunpack.i.l.bf16 %v1570_v63  ;;  %v1572_v9 = vunpack.i.h.bf16 %v1570_v63 }
 0x596   : > { %781 = vmatpush.msrb.mxu0 %v1566_v57  ;;  %v1107_v57 = vld [vmem:[#allocation6 + $0xb8] sm:$0xff] }
 0x598   : > { %782 = vmatpush.msrb.mxu0 %v1567_v1 }
 0x59a   : > { %783 = vmatpush.msrb.mxu0 %v1571_v52 }
 0x59b   : > { %1452 = vmatmul.msk.f32.vlgmr.msrb.gmra.mxu0 %vm697_vm12, %v764_v3 }
 0x59c   : > { %926 = vmatpush.msra.mxu0 %v1771_v25 }
 0x59e   : > { %927 = vmatpush.msra.mxu0 %v1557_v7 }
 0x5a0   : > { %928 = vmatpush.msra.mxu0 %v1561_v8 }
 0x5a2   : > { %929 = vmatpush.msra.mxu0 %v1562_v61 }
 0x5a4   : > { %930 = vmatpush.msra.mxu0 %v885_v27 }
 0x5a6   : > { %931 = vmatpush.msra.mxu0 %v884_v17 }
 0x5a8   : > { %932 = vmatpush.msra.mxu0 %v883_v16  ;;  %v977_v16 = vld [vmem:[#allocation6 + $0x90] sm:$0xff] }
 0x5aa   : > { %933 = vmatpush.msra.mxu0 %v1572_v9 }
 0x5ac   : > { %934 = vmatpush.msra.mxu0 %v1576_v10 }
 0x5ae   : > { %935 = vmatpush.msra.mxu0 %v1577_v11 }
 0x5af   : > { %1456 = vmatmul.msk.f32.vlgmr.msra.gmra.mxu0 %vm697_vm12, %v908_v41 }
 0x5b0   : > { %1004 = vmatpush.xpose.msrb.mxu0 %v2178_v24 }
 0x5b4   : > { %1005 = vmatpush.xpose.msrb.mxu0 %v2182_v30 }
 0x5b7   : > { %1457 = vmatmul.msk.f32.gmra.mxu0 %vm697_vm12, %v909_v51 }
 0x5b8   : > { %1006 = vmatpush.xpose.msrb.mxu0 %v2186_v31 }
 0x5bc   : > { %1007 = vmatpush.xpose.msrb.mxu0 %v2190_v33 }
 0x5bf   : > { %1458 = vmatmul.msk.f32.gmra.mxu0 %vm697_vm12, %v910_v6 }
 0x5c0   : > { %1008 = vmatpush.xpose.msrb.mxu0 %v2194_v29 }
 0x5c4   : > { %1009 = vmatpush.xpose.msrb.mxu0 %v2199_v34 }
 0x5c8   : > { %1010 = vmatpush.xpose.msrb.mxu0 %v2203_v36 }
 0x5cc   : > { %1011 = vmatpush.xpose.msrb.mxu0 %v2207_v38 }
 0x5d0   : > { %1012 = vmatpush.xpose.msrb.mxu0 %v2211_v42 }
 0x5d4   : > { %1013 = vmatpush.xpose.msrb.mxu0 %v2216_v44 }
 0x5d8   : > { %1014 = vmatpush.xpose.msrb.mxu0 %v2220_v45 }
 0x5dc   : > { %1015 = vmatpush.xpose.msrb.mxu0 %v2224_v46 }
 0x5e0   : > { %1016 = vmatpush.xpose.msrb.mxu0 %v2228_v47 }
 0x5e4   : > { %1017 = vmatpush.xpose.msrb.mxu0 %v2232_v48 }
 0x5e8   : > { %1018 = vmatpush.xpose.msrb.mxu0 %v2236_v49 }
 0x5ec   : > { %1019 = vmatpush.xpose.msrb.mxu0 %v2240_v50 }
 0x5f0   : > { %1129 = vmatpush.msra.mxu0 %v1771_v25 }
 0x618   : > { %v785_v24 = vpop.f32.mrf.mxu0 }
 0x619   : > { %vm788_vm5 = vcmp.ge.f32.partialorder %v785_v24, 0.0  ;;  %v789_v30 = vmul.f32 0.01, %v785_v24 }
 0x61b   : > { %v2296_v31 = vsel %vm788_vm5, %v785_v24, %v789_v30 }
 0x61c   : > { %1060 = vmatmul.f32.vlgmr.msrb.gmra.mxu2 %v2296_v31 }
 0x62c   : > { %v937_v33 = vpop.f32.mrf.mxu0 }
 0x62d   : > { %vm946_vm6 = vcmp.ge.f32.partialorder %v937_v33, 0.0  ;;  %v949_v29 = vmul.f32 0.01, %v937_v33 }
 0x62f   : > { %v952_v34 = vsel %vm946_vm6, %v937_v33, %v949_v29 }
 0x630   : > { %967 = vrot.lane.b32.xlu0 %v952_v34, %s1768_s11 }
 0x634   : > { %v940_v36 = vpop.f32.mrf.mxu0 }
 0x635   : > { %v950_v38 = vmul.f32 0.01, %v940_v36  ;;  %vm947_vm7 = vcmp.ge.f32.partialorder %v940_v36, 0.0 }
 0x637   : > { %v953_v45 = vsel %vm947_vm7, %v940_v36, %v950_v38 }
 0x63c   : > { %v943_v42 = vpop.f32.mrf.mxu0 }
 0x63d   : > { %vm948_vm9 = vcmp.ge.f32.partialorder %v943_v42, 0.0  ;;  %v951_v44 = vmul.f32 0.01, %v943_v42 }
 0x63f   : > { %v954_v46 = vsel %vm948_vm9, %v943_v42, %v951_v44 }
 0x640   : > { %v1583_v47 = vpack.i.bf16 %v953_v45, %v954_v46 }
 0x642   : > { %1584 = vrot.lane.b32.xlu1 %v1583_v47, %s1766_s20  ;;  %1579 = vrot.lane.b32.xlu2 %v1583_v47, %s1768_s11 }
 0x64a   : > { %958 = vrot.lane.b32.xlu2 %v952_v34, %s1766_s20 }
 0x69c   : > { %v1580_v48 = vpop.permute.xlu2 %1579 }
 0x69d   : > { %v1581_v49 = vunpack.i.l.bf16 %v1580_v48  ;;  %v1582_v50 = vunpack.i.h.bf16 %v1580_v48 }
 0x69f   : > { %988 = vmatpush.msrb.mxu3 %v1581_v49 }
 0x6a1   : > { %989 = vmatpush.msrb.mxu3 %v1582_v50 }
 0x6a2   : > { %v968_v12 = vpop.permute.xlu0 %967 }
 0x6a3   : > { %990 = vmatpush.msrb.mxu3 %v968_v12 }
 0x6a4   : > { %v959_v17 = vpop.permute.xlu2 %958 }
 0x6a5   : > { %991 = vmatpush.msrb.mxu3 %v954_v46 }
 0x6a7   : > { %992 = vmatpush.msrb.mxu3 %v953_v45 }
 0x6a9   : > { %993 = vmatpush.msrb.mxu3 %v952_v34 }
 0x6b4   : > { %v1585_v13 = vpop.permute.xlu1 %1584 }
 0x6b5   : > { %v1586_v14 = vunpack.i.l.bf16 %v1585_v13  ;;  %v1587_v15 = vunpack.i.h.bf16 %v1585_v13 }
 0x6b7   : > { %994 = vmatpush.msrb.mxu3 %v1586_v14 }
 0x6b9   : > { %995 = vmatpush.msrb.mxu3 %v1587_v15 }
 0x6bb   : > { %996 = vmatpush.msrb.mxu3 %v959_v17 }
 0x6bc   : > { %1459 = vmatmul.msk.f32.vlgmr.msrb.gmra.mxu3 %vm697_vm12, %v977_v16 }
 0x6bd   : > { %1064 = vmatpush.xpose.msra.mxu3 %v1943_v23  ;;  %v2388_v23 = vld [vmem:[#allocation10_spill] sm:$0xff] }
 0x6c1   : > { %1065 = vmatpush.xpose.msra.mxu3 %v1952_v26 }
 0x6c5   : > { %1066 = vmatpush.xpose.msra.mxu3 %v1961_v28 }
 0x6c9   : > { %1067 = vmatpush.xpose.msra.mxu3 %v1970_v32 }
 0x6cd   : > { %1068 = vmatpush.xpose.msra.mxu3 %v1981_v35 }
 0x6d1   : > { %1069 = vmatpush.xpose.msra.mxu3 %v1989_v37 }
 0x6d5   : > { %1070 = vmatpush.xpose.msra.mxu3 %v2001_v40  ;;  %v1061_v40 = vpop.f32.mrf.mxu2 }
 0x6d9   : > { %1071 = vmatpush.xpose.msra.mxu3 %v2010_v43 }
 0x6dd   : > { %1072 = vmatpush.xpose.msra.mxu3 %v2065_v56 }
 0x6e1   : > { %1073 = vmatpush.xpose.msra.mxu3 %v2073_v58 }
 0x6e5   : > { %1074 = vmatpush.xpose.msra.mxu3 %v2079_v60 }
 0x6e9   : > { %1075 = vmatpush.xpose.msra.mxu3 %v2087_v62 }
 0x6ed   : > { %1076 = vmatpush.xpose.msra.mxu3 %v2097_v0 }
 0x6f1   : > { %1077 = vmatpush.xpose.msra.mxu3 %v2105_v2 }
 0x6f5   : > { %1078 = vmatpush.xpose.msra.mxu3 %v2111_v4 }
 0x6f9   : > { %1079 = vmatpush.xpose.msra.mxu3 %v2388_v23 }
 0x6fc   : > { %1080 = vmatmul.f32.vlgmr.msra.gmra.mxu3 %v2296_v31 }
 0x6fd   : > { %1278 = vmatpush.msrb.mxu3 %v1771_v25 }
 0x73f   : > { %v998_v26 = vpop.f32.mrf.mxu3 }
 0x740   : > { %vm1001_vm10 = vcmp.ge.f32.partialorder %v998_v26, 0.0  ;;  %v1002_v28 = vmul.f32 0.01, %v998_v26 }
 0x742   : > { %v1003_v32 = vsel %vm1001_vm10, %v998_v26, %v1002_v28 }
 0x743   : > { %1020 = vmatmul.f32.vlgmr.msrb.gmra.mxu0 %v1003_v32  ;;  %v1296_v35 = vrot.slane %v1003_v32, 4  ;;  %1040 = vmatmul.f32.vlgmr.msra.gmra.mxu1 %v1003_v32 }
 0x745   : > { %v1299_v37 = vsel %vm1298_vm11, %v2296_v31, %v1296_v35 }
 0x746   : > { %1303 = vst [vmem:[%s2326_s22] sm:$0x77] %v1299_v37 }
 0x77f   : > { %v1081_v43 = vpop.f32.mrf.mxu3 }
 0x7c0   : > { %v1021_v56 = vpop.f32.mrf.mxu0  ;;  %v1041_v58 = vpop.f32.mrf.mxu1 }
 0x7c1   : > { %v1062_v60 = vadd.f32 %v1061_v40, %v1021_v56  ;;  %v1082_v62 = vadd.f32 %v1081_v43, %v1041_v58 }
 0x7c3   : > { %v1593_v0 = vpack.i.bf16 %v1062_v60, %v1082_v62  ;;  %v1588_v2 = vpack.i.bf16 %v1082_v62, %v1062_v60 }
 0x7c5   : > { %1594 = vrot.lane.b32.xlu1 %v1593_v0, %s1766_s20  ;;  %1589 = vrot.lane.b32.xlu0 %v1588_v2, %s1768_s11 }
 0x837   : > { %v1595_v4 = vpop.permute.xlu1 %1594  ;;  %v1590_v25 = vpop.permute.xlu0 %1589 }
 0x838   : > { %v1592_v18 = vunpack.i.h.bf16 %v1590_v25  ;;  %v1591_v19 = vunpack.i.l.bf16 %v1590_v25  ;;  %v1597_v20 = vunpack.i.h.bf16 %v1595_v4  ;;  %v1596_v21 = vunpack.i.l.bf16 %v1595_v4  ;;  %v1248_v25 = vld [vmem:[#allocation6 + $0xc0] sm:$0xff] }
 0x83a   : > { %v1099_v22 = vsel %vm388_vm1, %v1591_v19, %v1592_v18  ;;  %v1103_v27 = vsel %vm388_vm1, %v1592_v18, %v1591_v19  ;;  %v1094_v53 = vsel %vm376_vm3, %v1596_v21, %v1597_v20  ;;  %v1091_v54 = vsel %vm376_vm3, %v1597_v20, %v1596_v21 }
 0x83b   : > { %1130 = vmatpush.msra.mxu0 %v1099_v22  ;;  %1156 = vmatpush.msrb.mxu1 %v1103_v27 }
 0x83d   : > { %1131 = vmatpush.msra.mxu0 %v1062_v60  ;;  %1157 = vmatpush.msrb.mxu1 %v1082_v62 }
 0x83f   : > { %1132 = vmatpush.msra.mxu0 %v1094_v53  ;;  %1158 = vmatpush.msrb.mxu1 %v1091_v54 }
 0x840   : > { %1460 = vmatmul.msk.f32.vlgmr.msra.gmra.mxu0 %vm627_vm8, %v1105_v39  ;;  %1463 = vmatmul.msk.f32.vlgmr.msrb.gmra.mxu1 %vm627_vm8, %v1105_v39 }
 0x848   : > { %1461 = vmatmul.msk.f32.gmra.mxu0 %vm627_vm8, %v1106_v55  ;;  %1464 = vmatmul.msk.f32.gmra.mxu1 %vm627_vm8, %v1106_v55 }
 0x850   : > { %1462 = vmatmul.msk.f32.gmra.mxu0 %vm627_vm8, %v1107_v57  ;;  %1465 = vmatmul.msk.f32.gmra.mxu1 %vm627_vm8, %v1107_v57 }
 0x8bd   : > { %v1134_v63 = vpop.f32.mrf.mxu0  ;;  %v1160_v1 = vpop.f32.mrf.mxu1 }
 0x8be   : > { %vm1169_vm13 = vcmp.ge.f32.partialorder %v1134_v63, 0.0  ;;  %v1175_v52 = vmul.f32 0.01, %v1134_v63  ;;  %vm1170_vm14 = vcmp.ge.f32.partialorder %v1160_v1, 0.0  ;;  %v1176_v3 = vmul.f32 0.01, %v1160_v1 }
 0x8c0   : > { %v1181_v5 = vsel %vm1169_vm13, %v1134_v63, %v1175_v52  ;;  %v1182_v7 = vsel %vm1170_vm14, %v1160_v1, %v1176_v3 }
 0x8c1   : > { %v1608_v8 = vpack.i.bf16 %v1182_v7, %v1181_v5  ;;  %v1623_v51 = vpack.i.bf16 %v1181_v5, %v1182_v7 }
 0x8c3   : > { %1609 = vrot.lane.b32.xlu1 %v1608_v8, %s1768_s11 }
 0x8c5   : > { %v1137_v61 = vpop.f32.mrf.mxu0  ;;  %v1163_v59 = vpop.f32.mrf.mxu1 }
 0x8c6   : > { %vm1171_vm15 = vcmp.ge.f32.partialorder %v1137_v61, 0.0  ;;  %v1177_v9 = vmul.f32 0.01, %v1137_v61  ;;  %vm1172_vm0 = vcmp.ge.f32.partialorder %v1163_v59, 0.0  ;;  %v1178_v10 = vmul.f32 0.01, %v1163_v59 }
 0x8c8   : > { %v1183_v11 = vsel %vm1171_vm15, %v1137_v61, %v1177_v9  ;;  %v1184_v41 = vsel %vm1172_vm0, %v1163_v59, %v1178_v10 }
 0x8c9   : > { %v1603_v6 = vpack.i.bf16 %v1184_v41, %v1183_v11  ;;  %v1618_v36 = vpack.i.bf16 %v1183_v11, %v1184_v41 }
 0x8cb   : > { %1624 = vrot.lane.b32.xlu1 %v1623_v51, %s1766_s20  ;;  %1604 = vrot.lane.b32.xlu0 %v1603_v6, %s1768_s11 }
 0x8cd   : > { %v1166_v24 = vpop.f32.mrf.mxu1  ;;  %v1140_v30 = vpop.f32.mrf.mxu0 }
 0x8ce   : > { %vm1174_vm8 = vcmp.ge.f32.partialorder %v1166_v24, 0.0  ;;  %v1180_v31 = vmul.f32 0.01, %v1166_v24  ;;  %vm1173_vm2 = vcmp.ge.f32.partialorder %v1140_v30, 0.0  ;;  %v1179_v33 = vmul.f32 0.01, %v1140_v30 }
 0x8d0   : > { %v1186_v29 = vsel %vm1174_vm8, %v1166_v24, %v1180_v31  ;;  %v1185_v34 = vsel %vm1173_vm2, %v1140_v30, %v1179_v33 }
 0x8d1   : > { %v1598_v38 = vpack.i.bf16 %v1186_v29, %v1185_v34  ;;  %v1613_v42 = vpack.i.bf16 %v1185_v34, %v1186_v29 }
 0x8d3   : > { %1619 = vrot.lane.b32.xlu0 %v1618_v36, %s1766_s20  ;;  %1599 = vrot.lane.b32.xlu2 %v1598_v38, %s1768_s11 }
 0x8db   : > { %1614 = vrot.lane.b32.xlu2 %v1613_v42, %s1766_s20 }
 0x92d   : > { %v1600_v44 = vpop.permute.xlu2 %1599 }
 0x92e   : > { %v1602_v45 = vunpack.i.h.bf16 %v1600_v44  ;;  %v1601_v46 = vunpack.i.l.bf16 %v1600_v44 }
 0x930   : > { %v1234_v47 = vsel %vm388_vm1, %v1601_v46, %v1602_v45  ;;  %v1246_v48 = vsel %vm388_vm1, %v1602_v45, %v1601_v46 }
 0x931   : > { %1259 = vmatpush.msra.mxu2 %v1234_v47  ;;  %1279 = vmatpush.msrb.mxu3 %v1246_v48 }
 0x935   : > { %v1610_v49 = vpop.permute.xlu1 %1609  ;;  %v1615_v28 = vpop.permute.xlu2 %1614 }
 0x936   : > { %v1612_v12 = vunpack.i.h.bf16 %v1610_v49  ;;  %v1611_v13 = vunpack.i.l.bf16 %v1610_v49  ;;  %v1617_v35 = vunpack.i.h.bf16 %v1615_v28  ;;  %v1616_v37 = vunpack.i.l.bf16 %v1615_v28 }
 0x938   : > { %v1232_v23 = vsel %vm388_vm1, %v1611_v13, %v1612_v12  ;;  %v1244_v26 = vsel %vm388_vm1, %v1612_v12, %v1611_v13  ;;  %v1219_v62 = vsel %vm376_vm3, %v1616_v37, %v1617_v35  ;;  %v1210_v0 = vsel %vm376_vm3, %v1617_v35, %v1616_v37 }
 0x93d   : > { %v1605_v50 = vpop.permute.xlu0 %1604  ;;  %v1625_v40 = vpop.permute.xlu1 %1624 }
 0x93e   : > { %v1607_v14 = vunpack.i.h.bf16 %v1605_v50  ;;  %v1606_v15 = vunpack.i.l.bf16 %v1605_v50  ;;  %v1627_v58 = vunpack.i.h.bf16 %v1625_v40  ;;  %v1626_v60 = vunpack.i.l.bf16 %v1625_v40 }
 0x940   : > { %v1233_v16 = vsel %vm388_vm1, %v1606_v15, %v1607_v14  ;;  %v1245_v17 = vsel %vm388_vm1, %v1607_v14, %v1606_v15  ;;  %v1217_v18 = vsel %vm376_vm3, %v1626_v60, %v1627_v58  ;;  %v1208_v19 = vsel %vm376_vm3, %v1627_v58, %v1626_v60 }
 0x941   : > { %1260 = vmatpush.msra.mxu2 %v1233_v16  ;;  %1280 = vmatpush.msrb.mxu3 %v1245_v17 }
 0x943   : > { %1261 = vmatpush.msra.mxu2 %v1232_v23  ;;  %1281 = vmatpush.msrb.mxu3 %v1244_v26 }
 0x945   : > { %v1620_v32 = vpop.permute.xlu0 %1619  ;;  %1262 = vmatpush.msra.mxu2 %v1185_v34  ;;  %1282 = vmatpush.msrb.mxu3 %v1186_v29 }
 0x946   : > { %v1622_v43 = vunpack.i.h.bf16 %v1620_v32  ;;  %v1621_v56 = vunpack.i.l.bf16 %v1620_v32 }
 0x947   : > { %1263 = vmatpush.msra.mxu2 %v1183_v11  ;;  %1283 = vmatpush.msrb.mxu3 %v1184_v41 }
 0x948   : > { %v1218_v2 = vsel %vm376_vm3, %v1621_v56, %v1622_v43  ;;  %v1209_v4 = vsel %vm376_vm3, %v1622_v43, %v1621_v56 }
 0x949   : > { %1264 = vmatpush.msra.mxu2 %v1181_v5  ;;  %1284 = vmatpush.msrb.mxu3 %v1182_v7 }
 0x94b   : > { %1265 = vmatpush.msra.mxu2 %v1219_v62  ;;  %1285 = vmatpush.msrb.mxu3 %v1210_v0 }
 0x94d   : > { %1266 = vmatpush.msra.mxu2 %v1218_v2  ;;  %1286 = vmatpush.msrb.mxu3 %v1209_v4 }
 0x94f   : > { %1267 = vmatpush.msra.mxu2 %v1217_v18  ;;  %1287 = vmatpush.msrb.mxu3 %v1208_v19 }
 0x950   : > { %1467 = vmatmul.msk.f32.vlgmr.msrb.gmra.mxu3 %vm697_vm12, %v1248_v25  ;;  %1466 = vmatmul.msk.f32.vlgmr.msra.gmra.mxu2 %vm697_vm12, %v1248_v25 }
 0x9d3   : > { %v1289_v20 = vpop.f32.mrf.mxu3  ;;  %v1269_v21 = vpop.f32.mrf.mxu2 }
 0x9d4   : > { %v1297_v22 = vrot.slane %v1289_v20, 4 }
 0x9d6   : > { %v1300_v27 = vsel %vm1298_vm11, %v1269_v21, %v1297_v22 }
 0x9d7   : > { %1304 = vst [vmem:[%s2326_s22 + $0x8] sm:$0x77] %v1300_v27 }
 0x9d8 PF: > { %p17_p1 = scmp.ge.s32.totalorder %s1840_s27, 4   ;;  %s2389_s15 = smov %s1753_s16 }
 0x9d9   : > { %s2390_s16 = smov %s1757_s17  ;;  %s2391_s17 = smov %s1853_s6 }
 0x9da   : > { %s2392_s18 = smov %s1840_s27  ;;  %19 = sbr.rel (!%p17_p1) target bundleno = 5 (0x5), region = 104 }
 0x9df   :  { %1326 = vsyncpa [#allocation3], 1 }
 0x9e0   :  { %1328 = vsyncpa [#allocation3 + $0x1], 1 }
 0x9e1   :  { %1329 = vsyncpa [#allocation5], 1 }
 0x9e2   :  { %1331 = vsyncpa [#allocation5 + $0x1], 1 }

</bundles_post_ra>
